<compile_context>
chip_gen: v7x
topology: tpu7x:2x2x1
jax: 0.10.0
libtpu: 0.0.40
codegen_flags: <defaults>
</compile_context>

<pallas_src>
import jax
import jax.numpy as jnp
from jax.experimental import pallas as pl
from jax.experimental.pallas import tpu as pltpu

HIDDEN = 500          # logical hidden width (matches the PyTorch module)
HPAD = 512            # lane/sublane-aligned hidden width
KPAD = 8              # padded input-feature dim (2 real + 1 bias channel + 5 zero)
ONE_ROW = HIDDEN      # row index 500 carries the constant 1.0 (bias channel)


def mlp_kernel(x_ref, w1_ref, w2_ref, w3_ref, w4_ref, o_ref):
    # x_ref: (KPAD, TB) bf16 -- rows 0..1 = inputs^T, row 2 = 1.0, rows 3..7 = 0.
    # All matmuls are bf16 x bf16 on the MXU with f32 accumulation.
    # Biases are folded into the weights via the constant-1 channel, so there
    # are no separate bias adds; ReLU is applied to the packed bf16 value.
    h = jnp.dot(w1_ref[...], x_ref[...],
                preferred_element_type=jnp.float32)        # (HPAD, TB) f32
    h = jnp.maximum(h.astype(jnp.bfloat16), 0.0)

    h = jnp.dot(w2_ref[...], h, preferred_element_type=jnp.float32)
    h = jnp.maximum(h.astype(jnp.bfloat16), 0.0)

    h = jnp.dot(w3_ref[...], h, preferred_element_type=jnp.float32)
    h = jnp.maximum(h.astype(jnp.bfloat16), 0.0)

    y = jnp.dot(w4_ref[...], h, preferred_element_type=jnp.float32)  # (8, TB)
    o_ref[...] = y[0:1, :].astype(o_ref.dtype)             # lane-dense (1, TB)


def pack_params(params):
    """Transpose, zero-pad to (HPAD / KPAD), fold biases into a constant-1
    channel (row ONE_ROW), and cast to bf16.

    Zero pads + ReLU(0)=0 + the ones-channel propagating as ReLU(1)=1 keep the
    math identical to the unpadded network (up to bf16 rounding).
    """
    w1, b1 = params["w1"], params["b1"]        # (2, H), (1, H)
    w2, b2 = params["w2"], params["b2"]        # (H, H), (1, H)
    w3, b3 = params["w3"], params["b3"]
    w4, b4 = params["w4"], params["b4"]        # (H, 1), (1, 1)

    w1t = jnp.zeros((HPAD, KPAD), jnp.float32)
    w1t = w1t.at[:HIDDEN, 0:2].set(w1.T)
    w1t = w1t.at[:HIDDEN, 2].set(b1.reshape(-1))
    w1t = w1t.at[ONE_ROW, 2].set(1.0)          # creates the ones channel

    def hidden_layer(w, b):
        wt = jnp.zeros((HPAD, HPAD), jnp.float32)
        wt = wt.at[:HIDDEN, :HIDDEN].set(w.T)
        wt = wt.at[:HIDDEN, ONE_ROW].set(b.reshape(-1))
        wt = wt.at[ONE_ROW, ONE_ROW].set(1.0)  # re-emits the ones channel
        return wt

    w2t = hidden_layer(w2, b2)
    w3t = hidden_layer(w3, b3)

    w4t = jnp.zeros((8, HPAD), jnp.float32)
    w4t = w4t.at[0, :HIDDEN].set(w4.reshape(-1))
    w4t = w4t.at[0, ONE_ROW].set(b4.reshape(()))

    return dict(
        w1t=w1t.astype(jnp.bfloat16),
        w2t=w2t.astype(jnp.bfloat16),
        w3t=w3t.astype(jnp.bfloat16),
        w4t=w4t.astype(jnp.bfloat16),
    )


def _round_up(n, m):
    return ((n + m - 1) // m) * m


def _choose_tb(B):
    """Pick the batch tile: as large as possible (<=1024), >=2 grid steps when
    the batch allows it (keeps both v7x TensorCores busy), and bounded padding
    waste for ragged batch sizes."""
    b128 = _round_up(B, 128)
    if b128 <= 128:
        return 128
    for tb in (1024, 512, 256, 128):
        bpad = _round_up(B, tb)
        steps = bpad // tb
        waste_beyond_128 = bpad - b128
        if steps >= 2 and waste_beyond_128 <= bpad // 8:
            return tb
    return 128


def mlp_forward(x, packed_params):
    """x: (B, 2) float32; packed_params from pack_params(). Returns (B, 1) f32."""
    B = x.shape[0]
    TB = _choose_tb(B)
    B_pad = _round_up(B, TB)
    num_tiles = B_pad // TB

    # Lane-major augmented input: (KPAD, B_pad) bf16.
    x_aug = jnp.zeros((KPAD, B_pad), jnp.bfloat16)
    x_aug = x_aug.at[0:2, :B].set(x.T.astype(jnp.bfloat16))
    x_aug = x_aug.at[2, :].set(jnp.bfloat16(1.0))          # bias channel

    p = packed_params
    const = lambda i: (0, 0)       # weights stay VMEM-resident across the grid

    in_specs = [
        pl.BlockSpec((KPAD, TB), lambda i: (0, i)),        # x_aug
        pl.BlockSpec((HPAD, KPAD), const),                 # w1t
        pl.BlockSpec((HPAD, HPAD), const),                 # w2t
        pl.BlockSpec((HPAD, HPAD), const),                 # w3t
        pl.BlockSpec((8, HPAD), const),                    # w4t
    ]
    out_specs = pl.BlockSpec((1, TB), lambda i: (0, i))    # lane-dense output row

    out = pl.pallas_call(
        mlp_kernel,
        out_shape=jax.ShapeDtypeStruct((1, B_pad), jnp.float32),
        grid=(num_tiles,),
        in_specs=in_specs,
        out_specs=out_specs,
        compiler_params=pltpu.CompilerParams(
            dimension_semantics=("parallel",),  # batch tiles shard across v7x's 2 TCs
            vmem_limit_bytes=32 << 20,          # ~9 MiB actual peak at TB=1024
        ),
    )(x_aug, p["w1t"], p["w2t"], p["w3t"], p["w4t"])

    return out[0, :B][:, None]


def init_params(key, size=HIDDEN):
    """Deterministic init mimicking torch.nn.Linear defaults:
    U(-1/sqrt(fan_in), 1/sqrt(fan_in)) for both weight and bias.
    Stored as (in, out) so the reference does x @ W (== torch's x @ W.T)."""
    def linear(key, fan_in, fan_out):
        kw, kb = jax.random.split(key)
        bound = 1.0 / jnp.sqrt(jnp.float32(fan_in))
        w = jax.random.uniform(kw, (fan_in, fan_out), jnp.float32, -bound, bound)
        b = jax.random.uniform(kb, (1, fan_out), jnp.float32, -bound, bound)
        return w, b

    k1, k2, k3, k4 = jax.random.split(key, 4)
    w1, b1 = linear(k1, 2, size)
    w2, b2 = linear(k2, size, size)
    w3, b3 = linear(k3, size, size)
    w4, b4 = linear(k4, size, 1)
    return dict(w1=w1, b1=b1, w2=w2, b2=b2, w3=w3, b3=b3, w4=w4, b4=b4)


def mlp_reference(x, p):
    h = jnp.maximum(x @ p["w1"] + p["b1"], 0.0)
    h = jnp.maximum(h @ p["w2"] + p["b2"], 0.0)
    h = jnp.maximum(h @ p["w3"] + p["b3"], 0.0)
    return h @ p["w4"] + p["b4"]


if __name__ == "__main__":
    key = jax.random.PRNGKey(0)
    k_params, k_x = jax.random.split(key)

    params = init_params(k_params, size=HIDDEN)
    packed = pack_params(params)

    batch = 200   # small, but exercises the ragged-batch path and a 2-step grid
    x = jax.random.normal(k_x, (batch, 2), dtype=jnp.float32)

    out = mlp_forward(x, packed)
    out = jax.block_until_ready(out)

    ref = mlp_reference(x, params)   # pure f32 reference, unpadded params
    assert out.shape == (batch, 1), out.shape
    # Tolerance loosened for bf16 weights/activations (f32 accumulation keeps error small).
    assert jnp.allclose(out, ref, atol=2e-2, rtol=5e-2), (
        "mismatch vs reference", float(jnp.max(jnp.abs(out - ref))))

    print("KERNEL_OK")
</pallas_src>

<mosaic_0001>
module attributes {stable_mosaic.version = 11 : i64} {
  func.func @mlp_kernel(%arg0: i32, %arg1: memref<8x128xbf16, #tpu.memory_space<vmem>>, %arg2: memref<512x8xbf16, #tpu.memory_space<vmem>>, %arg3: memref<512x512xbf16, #tpu.memory_space<vmem>>, %arg4: memref<512x512xbf16, #tpu.memory_space<vmem>>, %arg5: memref<8x512xbf16, #tpu.memory_space<vmem>>, %arg6: memref<1x128xf32, #tpu.memory_space<vmem>>) attributes {dimension_semantics = [#tpu.dimension_semantics<parallel>], iteration_bounds = array<i64: 2>, scalar_prefetch = 0 : i64, scratch_operands = 0 : i64, tpu.core_type = #tpu.core_type<tc>, window_params = [{transform_indices = @transform_0, window_bounds = array<i64: 8, 128>}, {pipeline_mode = #tpu.pipeline_mode<synchronous>, transform_indices = @transform_1, window_bounds = array<i64: 512, 8>}, {pipeline_mode = #tpu.pipeline_mode<synchronous>, transform_indices = @transform_2, window_bounds = array<i64: 512, 512>}, {pipeline_mode = #tpu.pipeline_mode<synchronous>, transform_indices = @transform_3, window_bounds = array<i64: 512, 512>}, {pipeline_mode = #tpu.pipeline_mode<synchronous>, transform_indices = @transform_4, window_bounds = array<i64: 8, 512>}, {transform_indices = @transform_5, window_bounds = array<i64: 1, 128>}]} {
    %c0 = arith.constant 0 : index
    %c0_0 = arith.constant 0 : index
    %0 = vector.load %arg2[%c0, %c0_0] : memref<512x8xbf16, #tpu.memory_space<vmem>>, vector<512x8xbf16>
    %c0_1 = arith.constant 0 : index
    %c0_2 = arith.constant 0 : index
    %1 = vector.load %arg1[%c0_1, %c0_2] : memref<8x128xbf16, #tpu.memory_space<vmem>>, vector<8x128xbf16>
    %cst = arith.constant dense<0.000000e+00> : vector<512x128xf32>
    %2 = tpu.matmul %0, %1, %cst {dimension_numbers = #tpu.dot_dimension_numbers<[1], [0], [0], [1], [0, 0, 1, 1], [], []>} : vector<512x8xbf16>, vector<8x128xbf16>, vector<512x128xf32> -> vector<512x128xf32>
    %3 = arith.truncf %2 : vector<512x128xf32> to vector<512x128xbf16>
    %cst_3 = arith.constant 0.000000e+00 : bf16
    %4 = vector.broadcast %cst_3 : bf16 to vector<512x128xbf16>
    %5 = arith.maximumf %3, %4 : vector<512x128xbf16>
    %c0_4 = arith.constant 0 : index
    %c0_5 = arith.constant 0 : index
    %6 = vector.load %arg3[%c0_4, %c0_5] : memref<512x512xbf16, #tpu.memory_space<vmem>>, vector<512x512xbf16>
    %cst_6 = arith.constant dense<0.000000e+00> : vector<512x128xf32>
    %7 = tpu.matmul %6, %5, %cst_6 {dimension_numbers = #tpu.dot_dimension_numbers<[1], [0], [0], [1], [0, 0, 1, 1], [], []>} : vector<512x512xbf16>, vector<512x128xbf16>, vector<512x128xf32> -> vector<512x128xf32>
    %8 = arith.truncf %7 : vector<512x128xf32> to vector<512x128xbf16>
    %cst_7 = arith.constant 0.000000e+00 : bf16
    %9 = vector.broadcast %cst_7 : bf16 to vector<512x128xbf16>
    %10 = arith.maximumf %8, %9 : vector<512x128xbf16>
    %c0_8 = arith.constant 0 : index
    %c0_9 = arith.constant 0 : index
    %11 = vector.load %arg4[%c0_8, %c0_9] : memref<512x512xbf16, #tpu.memory_space<vmem>>, vector<512x512xbf16>
    %cst_10 = arith.constant dense<0.000000e+00> : vector<512x128xf32>
    %12 = tpu.matmul %11, %10, %cst_10 {dimension_numbers = #tpu.dot_dimension_numbers<[1], [0], [0], [1], [0, 0, 1, 1], [], []>} : vector<512x512xbf16>, vector<512x128xbf16>, vector<512x128xf32> -> vector<512x128xf32>
    %13 = arith.truncf %12 : vector<512x128xf32> to vector<512x128xbf16>
    %cst_11 = arith.constant 0.000000e+00 : bf16
    %14 = vector.broadcast %cst_11 : bf16 to vector<512x128xbf16>
    %15 = arith.maximumf %13, %14 : vector<512x128xbf16>
    %c0_12 = arith.constant 0 : index
    %c0_13 = arith.constant 0 : index
    %16 = vector.load %arg5[%c0_12, %c0_13] : memref<8x512xbf16, #tpu.memory_space<vmem>>, vector<8x512xbf16>
    %cst_14 = arith.constant dense<0.000000e+00> : vector<8x128xf32>
    %17 = tpu.matmul %16, %15, %cst_14 {dimension_numbers = #tpu.dot_dimension_numbers<[1], [0], [0], [1], [0, 0, 1, 1], [], []>} : vector<8x512xbf16>, vector<512x128xbf16>, vector<8x128xf32> -> vector<8x128xf32>
    %18 = vector.extract_strided_slice %17 {offsets = [0, 0], sizes = [1, 128], strides = [1, 1]} : vector<8x128xf32> to vector<1x128xf32>
    %c0_15 = arith.constant 0 : index
    %c0_16 = arith.constant 0 : index
    %19 = vector.load %arg6[%c0_15, %c0_16] : memref<1x128xf32, #tpu.memory_space<vmem>>, vector<1x128xf32>
    tpu.vector_store %arg6[%c0_15, %c0_16], %18 {strides = array<i32>} : memref<1x128xf32, #tpu.memory_space<vmem>>, vector<1x128xf32>,
    return
  }
  func.func @transform_0(%arg0: i32) -> (i32, i32) {
    %c0_i32 = arith.constant 0 : i32
    %c0_i32_0 = arith.constant 0 : i32
    return %c0_i32, %arg0 : i32, i32
  }
  func.func @transform_1(%arg0: i32) -> (i32, i32) {
    %c0_i32 = arith.constant 0 : i32
    %c0_i32_0 = arith.constant 0 : i32
    %c0_i32_1 = arith.constant 0 : i32
    return %c0_i32, %c0_i32_0 : i32, i32
  }
  func.func @transform_2(%arg0: i32) -> (i32, i32) {
    %c0_i32 = arith.constant 0 : i32
    %c0_i32_0 = arith.constant 0 : i32
    %c0_i32_1 = arith.constant 0 : i32
    return %c0_i32, %c0_i32_0 : i32, i32
  }
  func.func @transform_3(%arg0: i32) -> (i32, i32) {
    %c0_i32 = arith.constant 0 : i32
    %c0_i32_0 = arith.constant 0 : i32
    %c0_i32_1 = arith.constant 0 : i32
    return %c0_i32, %c0_i32_0 : i32, i32
  }
  func.func @transform_4(%arg0: i32) -> (i32, i32) {
    %c0_i32 = arith.constant 0 : i32
    %c0_i32_0 = arith.constant 0 : i32
    %c0_i32_1 = arith.constant 0 : i32
    return %c0_i32, %c0_i32_0 : i32, i32
  }
  func.func @transform_5(%arg0: i32) -> (i32, i32) {
    %c0_i32 = arith.constant 0 : i32
    %c0_i32_0 = arith.constant 0 : i32
    return %c0_i32, %arg0 : i32, i32
  }
}

</mosaic_0001>

<bundles_post_ra>
// kernel: tpu_custom_call.1
= control target key start
LH: loop header
LB: loop body
LE: loop exit
PB: predicated region body
PF: predicated region fallthrough
CT: control target
= control target key end

     0   :  { %10 = vsyncpa [#allocation3], 0  ;;  %s5866_s0 = inlined_call_operand.vmem [shape: bf16[8,256], index: 0, kind: input, shape index: {}]   ;;  %s5867_s1 = inlined_call_operand.vmem [shape: bf16[512,8], index: 1, kind: input, shape index: {}]   ;;  %s5868_s2 = inlined_call_operand.hbm [shape: bf16[512,512], index: 2, kind: input, shape index: {}]   ;;  %s5869_s3 = inlined_call_operand.hbm [shape: bf16[512,512], index: 3, kind: input, shape index: {}]   ;;  %s5870_s4 = inlined_call_operand.vmem [shape: bf16[8,512], index: 4, kind: input, shape index: {}]   ;;  %s5871_s5 = inlined_call_operand.hbm [shape: f32[1,256], index: 5, kind: output, shape index: {}]  }
   0x1   :  { %11 = vsyncpa [#allocation6], 0 }
   0x2   :  { %12 = vsyncpa [#allocation4], 0 }
   0x3   :  { %14 = vsyncpa [#allocation4 + $0x1], 0  ;;  %s5322_s18 = smov 0   ;;  %s5324_s19 = smov 0  }
   0x4   :  { %s5326_s20 = smov 0   ;;  %s5328_s21 = smov 0  }
   0x5 LB: > { %s5343_s22 = sadd.s32 4294967295, %s5284_s21   ;;  %s3936_s23 = sadd.s32 4294967294, %s5284_s21   ;;  %s5284_s21 = sphi %s5328_s21, %s5889_s21   ;;  %s5280_s20 = sphi %s5326_s20, %s5888_s20   ;;  %s5276_s19 = sphi %s5324_s19, %s5887_s19   ;;  %s5272_s18 = sphi %s5322_s18, %s5886_s18  }
   0x6   : > { %s5347_s24 = sadd.s32 1, %s5284_s21   ;;  %s137_s25 = sadd.s32 1, %s5280_s20 }
   0x7   : > { %s134_s26 = ssub.s32 %s5284_s21, %s5347_s24  ;;  %p147_p0 = scmp.ne.s32.totalorder %s5280_s20, %s5276_s19 }
   0x8   : > { %p135_p1 = scmp.eq.s32.totalorder %s134_s26, 0  ;;  %p148_p2 = scmp.eq.s32.totalorder %s5343_s22, 1 }
   0x9   : > { %p153_p3 = scmp.ne.s32.totalorder %s5276_s19, %s5272_s18  ;;  %p154_p4 = scmp.eq.s32.totalorder %s3936_s23, 1 }
   0xa   : > { %s5358_s27 = scalar_select %p135_p1, %s5280_s20, %s137_s25  }
   0xb   : > { %p5360_p5 = por %p148_p2, %p147_p0  ;;  %p5364_p6 = por %p154_p4, %p153_p3 }
   0xc   : > { %p3937_p7 = scmp.ge.s32.totalorder %s5284_s21, 1  ;;  %p161_p8 = scmp.lt.s32.totalorder %s5284_s21, 3 }
   0xd   : > { %s5875_s28 = scalar_select %p5360_p5, 1, 0 }
   0xe   : > { %s5876_s29 = scalar_select %p5364_p6, 1, 0 }
   0xf   : > { %p5872_p9 = scmp.eq.s32.totalorder %s5343_s22, 0  ;;  %p5371_p10 = pnand %p3937_p7, %p161_p8 }
  0x10   : > { %s5286_s6 = smov [#allocation2]   ;;  %s5287_s9 = smov [#allocation5]  }
  0x11   : > { %s5877_s30 = scalar_select %p5371_p10, 1, 0 }
  0x12   : > { %s176_s7 = sshll.u32 %s5286_s6, 4  ;;  %p4685_p11 = pneg %p5371_p10  ;;  %s177_s7 = int_to_ptr.vmem [resolvable:$true] %s176_s7 }
  0x13   : > { %s189_s10 = sshll.u32 %s5287_s9, 4  ;;  %s5158_s13 = scalar_lea.hbm %s5868_s2, 16384  ;;  %s5383_s10 = int_to_ptr.vmem [resolvable:$true] %s189_s10 }
  0x14   : > { %p5379_p12 = pnand %p5872_p9, %p4685_p11  ;;  %p5159_p13 = scmp.ne.s32.totalorder %s5868_s2, %s5158_s13 }
  0x15   : > { %p5165_p3 = scmp.lt.u32.totalorder %s5158_s13, %s5868_s2 }
  0x16   : > { %p5160_p0 = pneg %p5379_p12 }
  0x18   : > { %p5161_p1 = pnand %p5160_p0, %p5159_p13 }
  0x1a   : > { %p5162_p2 = pneg %p5161_p1 }
  0x1c   : > { %p5167_p4 = pnand %p5165_p3, %p5162_p2 }
  0x1e   : > { %5170 = shalt.err (!%p5167_p4)
}
  0x1f   : > { %s5171_s23 = scalar_lea.vmem %s177_s7, 16384  ;;  %p5179_p9 = scmp.lt.s32.totalorder %s177_s7, %s177_s7 }
  0x20   : > { %p5172_p7 = scmp.ne.s32.totalorder %s177_s7, %s5171_s23  ;;  %p5180_p6 = scmp.lt.s32.totalorder %s5171_s23, %s5171_s23 }
  0x22   : > { %p5174_p8 = pnand %p5172_p7, %p5160_p0  ;;  %p5181_p5 = por %p5180_p6, %p5179_p9 }
  0x24   : > { %p5175_p11 = pneg %p5174_p8 }
  0x26   : > { %p5182_p10 = pnand %p5181_p5, %p5175_p11 }
  0x28   : > { %5185 = shalt.err (!%p5182_p10)
}
  0x29   : > { %s5288_s25 = smov 256   ;;  %s5289_s26 = smov 16  }
  0x2a   : > { %4688 = dma.hbm_to_vmem [thread:$0]  (!%p5379_p12), %s5868_s2, 16384, %s177_s7, [#allocation3], %s5288_s25, %s5288_s25, %s5289_s26  }
  0x2b   : > { %s5186_s13 = scalar_lea.hbm %s5869_s3, 16384 }
  0x2c   : > { %p5187_p13 = scmp.ne.s32.totalorder %s5869_s3, %s5186_s13  ;;  %p5193_p9 = scmp.lt.u32.totalorder %s5186_s13, %s5869_s3 }
  0x2e   : > { %p5189_p5 = pnand %p5187_p13, %p5160_p0 }
  0x30   : > { %p5190_p6 = pneg %p5189_p5 }
  0x32   : > { %p5195_p10 = pnand %p5193_p9, %p5190_p6 }
  0x34   : > { %5198 = shalt.err (!%p5195_p10)
}
  0x35   : > { %s5199_s7 = scalar_lea.vmem %s5383_s10, 16384  ;;  %p5207_p4 = scmp.lt.s32.totalorder %s5383_s10, %s5383_s10 }
  0x36   : > { %p5200_p1 = scmp.ne.s32.totalorder %s5383_s10, %s5199_s7  ;;  %p5208_p7 = scmp.lt.s32.totalorder %s5199_s7, %s5199_s7 }
  0x38   : > { %p5202_p2 = pnand %p5200_p1, %p5160_p0  ;;  %p5209_p8 = por %p5208_p7, %p5207_p4 }
  0x3a   : > { %p5203_p3 = pneg %p5202_p2 }
  0x3c   : > { %p5210_p11 = pnand %p5209_p8, %p5203_p3 }
  0x3e   : > { %5213 = shalt.err (!%p5210_p11)
}
  0x3f   : > { %4691 = dma.hbm_to_vmem [thread:$0]  (!%p5379_p12), %s5869_s3, 16384, %s5383_s10, [#allocation6], %s5288_s25, %s5288_s25, %s5289_s26  }
  0x40   : > { %p5879_p13 = scmp.ne.s32.totalorder %s5877_s30, 0 }
  0x41   : > { %p5880_p5 = scmp.eq.s32.totalorder (!%p5879_p13), %s5343_s22, 0 }
  0x42   : > { %215 = sbr.rel (%p5879_p13) target bundleno = 1925 (0x785), region = 40 }
  0x49   : > { %5259 = dma.done.wait (%p5880_p5), [#allocation3], 16384   ;;  %p5881_p0 = pmov %p5880_p5 }
  0x4b   : > { %5261 = vsyncadd (%p5881_p0), [#allocation3], 4294950912  ;;  %p5882_p6 = pmov %p5881_p0 }
  0x4c   : > { %p5883_p9 = pmov %p5881_p0 }
  0x4d   : > { %5263 = dma.done.wait (%p5882_p6), [#allocation6], 16384  }
  0x4e   : > { %5265 = vsyncadd (%p5883_p9), [#allocation6], 4294950912  ;;  %p245_p10 = scmp.lt.s32.totalorder %s5343_s22, 1  ;;  %vm572_vm0 = vcmask 1043456   ;;  %vm475_vm1 = vcmask 64512   ;;  %v4738_v2 = vld [vmem:[%s5867_s1] sm:$0xff]  }
  0x4f   : > { %v4739_v3 = vld [vmem:[%s5867_s1 + $0x8] sm:$0xff]   ;;  %4351 = vmatprep.mubr.msk.bf16.mxu0 %vm475_vm1, %v4738_v2  ;;  %v4740_v4 = vld [vmem:[%s5867_s1 + $0x10] sm:$0xff]   ;;  %v4741_v5 = vld [vmem:[%s5867_s1 + $0x18] sm:$0xff]   ;;  %v5290_v20 = vmov 0   ;;  %s243_s14 = sand.u32 1, %s5276_s19   ;;  %s4269_s15 = sshll.u32 %s5343_s22, 4 }
  0x50   : > { %s246_s8 = scalar_select %p245_p10, %s5343_s22, 1  ;;  %v4742_v6 = vld [vmem:[%s5867_s1 + $0x20] sm:$0xff]   ;;  %v4743_v7 = vld [vmem:[%s5867_s1 + $0x28] sm:$0xff]   ;;  %v4744_v8 = vld [vmem:[%s5867_s1 + $0x30] sm:$0xff]  }
  0x51   : > { %v4754_v9 = vld [vmem:[%s5867_s1 + $0x80] sm:$0xff]   ;;  %v4745_v10 = vld [vmem:[%s5867_s1 + $0x38] sm:$0xff]   ;;  %v4747_v12 = vld [vmem:[%s5867_s1 + $0x48] sm:$0xff]   ;;  %s244_s16 = scalar_lea.vmem [#allocation7], %s243_s14  ;;  %s5824_s6 = scalar_lea.hbm %s5871_s5, %s4269_s15 }
  0x52   : > { %s3944_s10 = sshll.u32 %s246_s8, 2  ;;  %4383 = vmatprep.mubr.msk.bf16.mxu1 %vm475_vm1, %v4754_v9  ;;  %v4746_v11 = vld [vmem:[%s5867_s1 + $0x40] sm:$0xff]   ;;  %v4748_v13 = vld [vmem:[%s5867_s1 + $0x50] sm:$0xff]   ;;  %v4749_v14 = vld [vmem:[%s5867_s1 + $0x58] sm:$0xff]   ;;  %s3859_s17 = sshll.u32 %s244_s16, 4  ;;  %s5826_s17 = int_to_ptr.vmem [resolvable:$true] %s3859_s17 }
  0x53   : > { %s248_s26 = scalar_lea.vmem %s5866_s0, %s3944_s10  ;;  %v4750_v15 = vld [vmem:[%s5867_s1 + $0x60] sm:$0xff]   ;;  %v4751_v16 = vld [vmem:[%s5867_s1 + $0x68] sm:$0xff]   ;;  %v4752_v17 = vld [vmem:[%s5867_s1 + $0x70] sm:$0xff]   ;;  %s3847_s8 = scalar_lea.sflag [#allocation4], %s243_s14 }
  0x54   : > { %v314_v0 = vld [vmem:[%s248_s26] sm:$0xf]  ;;  %v4753_v18 = vld [vmem:[%s5867_s1 + $0x78] sm:$0xff]   ;;  %v4755_v19 = vld [vmem:[%s5867_s1 + $0x88] sm:$0xff]   ;;  %s5214_s10 = scalar_lea.vmem %s5826_s17, 16  ;;  %p5884_p1 = scmp.ne.s32.totalorder %s5875_s28, 0 }
  0x55   : > { %4673 = vmatprep.subr.msk.bf16.mxu0 %vm572_vm0, %v314_v0  ;;  %v574_v1 = vsel %vm572_vm0, %v314_v0, 0  ;;  %4674 = vmatprep.subr.msk.bf16.mxu1 %vm572_vm0, %v314_v0  ;;  %v4756_v21 = vld [vmem:[%s5867_s1 + $0x90] sm:$0xff]   ;;  %v4757_v22 = vld [vmem:[%s5867_s1 + $0x98] sm:$0xff]   ;;  %v4758_v23 = vld [vmem:[%s5867_s1 + $0xa0] sm:$0xff]   ;;  %p5215_p12 = scmp.ne.s32.totalorder %s5826_s17, %s5214_s10  ;;  %s5291_s22 = smov [#allocation7]  }
  0x56   : > { %4350 = vmatpush3.bf16.msra.mxu0 %v574_v1  ;;  %4416 = vmatpush3.bf16.msra.mxu1 %v574_v1  ;;  %v4759_v24 = vld [vmem:[%s5867_s1 + $0xa8] sm:$0xff]   ;;  %v4760_v25 = vld [vmem:[%s5867_s1 + $0xb0] sm:$0xff]   ;;  %v4761_v26 = vld [vmem:[%s5867_s1 + $0xb8] sm:$0xff]   ;;  %s5218_s25 = sshll.u32 %s5291_s22, 4  ;;  %s5219_s25 = int_to_ptr.vmem [resolvable:$false] %s5218_s25 }
  0x57   : > { %1697 = vmatprep.subr.bf16.mxu1 %v5290_v20  ;;  %3107 = vmatprep.subr.bf16.mxu0 %v5290_v20  ;;  %v4762_v27 = vld [vmem:[%s5867_s1 + $0xc0] sm:$0xff]   ;;  %v4763_v28 = vld [vmem:[%s5867_s1 + $0xc8] sm:$0xff]   ;;  %v4764_v29 = vld [vmem:[%s5867_s1 + $0xd0] sm:$0xff]   ;;  %p5216_p2 = pnand %p5215_p12, %p5884_p1  ;;  %s5220_s30 = scalar_lea.vmem %s5219_s25, 32 }
  0x58   : > { %v4765_v30 = vld [vmem:[%s5867_s1 + $0xd8] sm:$0xff]   ;;  %v4766_v31 = vld [vmem:[%s5867_s1 + $0xe0] sm:$0xff]   ;;  %v4767_v32 = vld [vmem:[%s5867_s1 + $0xe8] sm:$0xff]   ;;  %p5221_p4 = scmp.lt.s32.totalorder %s5826_s17, %s5219_s25  ;;  %p5222_p7 = scmp.lt.s32.totalorder %s5220_s30, %s5214_s10 }
  0x59   : > { %4352 = vmatmul.mubr.msk.bf16.vlgmr.msra.gmra.mrb[0].mxu0 %vm475_vm1, %v4739_v3  ;;  %4384 = vmatmul.mubr.msk.bf16.vlgmr.msra.gmra.mrb[0].mxu1 %vm475_vm1, %v4755_v19  ;;  %v4768_v33 = vld [vmem:[%s5867_s1 + $0xf0] sm:$0xff]   ;;  %v4769_v34 = vld [vmem:[%s5867_s1 + $0xf8] sm:$0xff]   ;;  %p5217_p3 = pneg %p5216_p2 }
  0x5a   : > { %4355 = vmatprep.mubr.msk.bf16.mxu0 %vm475_vm1, %v4740_v4  ;;  %4387 = vmatprep.mubr.msk.bf16.mxu1 %vm475_vm1, %v4756_v21  ;;  %v4772_v35 = vld [vmem:[#allocation2 + $0x4] ss:$16 sps:$4 sm:$0xff]   ;;  %p5223_p8 = por %p5222_p7, %p5221_p4 }
  0x5c   : > { %p5224_p11 = pnand %p5223_p8, %p5217_p3 }
  0x61   : > { %4356 = vmatmul.mubr.msk.bf16.gmra.mrb[4].mxu0 %vm475_vm1, %v4741_v5  ;;  %4388 = vmatmul.mubr.msk.bf16.gmra.mrb[4].mxu1 %vm475_vm1, %v4757_v22 }
  0x62   : > { %4359 = vmatprep.mubr.msk.bf16.mxu0 %vm475_vm1, %v4742_v6  ;;  %4391 = vmatprep.mubr.msk.bf16.mxu1 %vm475_vm1, %v4758_v23 }
  0x69   : > { %4360 = vmatmul.mubr.msk.bf16.gmra.mrb[8].mxu0 %vm475_vm1, %v4743_v7  ;;  %4392 = vmatmul.mubr.msk.bf16.gmra.mrb[8].mxu1 %vm475_vm1, %v4759_v24 }
  0x6a   : > { %4363 = vmatprep.mubr.msk.bf16.mxu0 %vm475_vm1, %v4744_v8  ;;  %4395 = vmatprep.mubr.msk.bf16.mxu1 %vm475_vm1, %v4760_v25 }
  0x71   : > { %4364 = vmatmul.mubr.msk.bf16.gmra.mrb[12].mxu0 %vm475_vm1, %v4745_v10  ;;  %4396 = vmatmul.mubr.msk.bf16.gmra.mrb[12].mxu1 %vm475_vm1, %v4761_v26 }
  0x72   : > { %4367 = vmatprep.mubr.msk.bf16.mxu0 %vm475_vm1, %v4746_v11  ;;  %4399 = vmatprep.mubr.msk.bf16.mxu1 %vm475_vm1, %v4762_v27 }
  0x79   : > { %4368 = vmatmul.mubr.msk.bf16.gmra.mrb[16].mxu0 %vm475_vm1, %v4747_v12  ;;  %4400 = vmatmul.mubr.msk.bf16.gmra.mrb[16].mxu1 %vm475_vm1, %v4763_v28 }
  0x7a   : > { %4371 = vmatprep.mubr.msk.bf16.mxu0 %vm475_vm1, %v4748_v13  ;;  %4403 = vmatprep.mubr.msk.bf16.mxu1 %vm475_vm1, %v4764_v29 }
  0x81   : > { %4372 = vmatmul.mubr.msk.bf16.gmra.mrb[20].mxu0 %vm475_vm1, %v4749_v14  ;;  %4404 = vmatmul.mubr.msk.bf16.gmra.mrb[20].mxu1 %vm475_vm1, %v4765_v30 }
  0x82   : > { %4375 = vmatprep.mubr.msk.bf16.mxu0 %vm475_vm1, %v4750_v15  ;;  %4407 = vmatprep.mubr.msk.bf16.mxu1 %vm475_vm1, %v4766_v31 }
  0x89   : > { %4376 = vmatmul.mubr.msk.bf16.gmra.mrb[24].mxu0 %vm475_vm1, %v4751_v16  ;;  %4408 = vmatmul.mubr.msk.bf16.gmra.mrb[24].mxu1 %vm475_vm1, %v4767_v32 }
  0x8a   : > { %4379 = vmatprep.mubr.msk.bf16.mxu0 %vm475_vm1, %v4752_v17  ;;  %4411 = vmatprep.mubr.msk.bf16.mxu1 %vm475_vm1, %v4768_v33 }
  0x91   : > { %4380 = vmatmul.mubr.msk.bf16.gmra.mrb[28].mxu0 %vm475_vm1, %v4753_v18  ;;  %4412 = vmatmul.mubr.msk.bf16.gmra.mrb[28].mxu1 %vm475_vm1, %v4769_v34 }
  0x92   : > { %1729 = vmatprep.mubr.bf16.mxu1 %v4772_v35 }
 0x12c   : > { %v4353_v36 = vpop.f32.mrb[0].mxu0 }
 0x12d   : > { %v610_v37 = vpop.f32.mrb[1].mxu0 }
 0x12e   : > { %v4354_v38 = vpop.f32.mrb[2].mxu0 }
 0x12f   : > { %v866_v39 = vpack.c.bf16 %v4354_v38, %v4353_v36  ;;  %v613_v40 = vpop.f32.mrb[3].mxu0  ;;  %v4773_v38 = vld [vmem:[#allocation2 + $0x24] ss:$16 sps:$4 sm:$0xff]  }
 0x130   : > { %v865_v41 = vpack.c.bf16 %v613_v40, %v610_v37  ;;  %v4770_v37 = vld [vmem:[#allocation2] ss:$16 sps:$4 sm:$0xff]   ;;  %v4776_v40 = vld [vmem:[#allocation2 + $0x44] ss:$16 sps:$4 sm:$0xff]  }
 0x131   : > { %v898_v45 = vmax.bf16 %v5290_v20, %v866_v39  ;;  %v4775_v39 = vld [vmem:[#allocation2 + $0x20] ss:$16 sps:$4 sm:$0xff]  }
 0x132   : > { %v897_v42 = vmax.bf16 %v5290_v20, %v865_v41  ;;  %v4778_v41 = vld [vmem:[#allocation2 + $0x40] ss:$16 sps:$4 sm:$0xff]  }
 0x134   : > { %v4357_v43 = vpop.f32.mrb[4].mxu0  ;;  %1698 = vmatpush1.bf16.msra.mxu1 %v897_v42  ;;  %v4385_v42 = vpop.f32.mrb[0].mxu1 }
 0x135   : > { %v626_v44 = vpop.f32.mrb[5].mxu0  ;;  %1699 = vmatprep.subr.bf16.mxu1 %v5290_v20 }
 0x136   : > { %v4358_v46 = vpop.f32.mrb[6].mxu0 }
 0x137   : > { %v868_v47 = vpack.c.bf16 %v4358_v46, %v4357_v43  ;;  %v629_v48 = vpop.f32.mrb[7].mxu0  ;;  %v4779_v43 = vld [vmem:[#allocation2 + $0x64] ss:$16 sps:$4 sm:$0xff]  }
 0x138   : > { %v867_v49 = vpack.c.bf16 %v629_v48, %v626_v44  ;;  %1700 = vmatpush1.bf16.msra.mxu1 %v898_v45  ;;  %v738_v44 = vpop.f32.mrb[1].mxu1 }
 0x139   : > { %1701 = vmatprep.subr.bf16.mxu1 %v5290_v20  ;;  %v900_v53 = vmax.bf16 %v5290_v20, %v868_v47  ;;  %v4386_v45 = vpop.f32.mrb[2].mxu1 }
 0x13a   : > { %v899_v50 = vmax.bf16 %v5290_v20, %v867_v49  ;;  %v882_v46 = vpack.c.bf16 %v4386_v45, %v4385_v42  ;;  %v741_v47 = vpop.f32.mrb[3].mxu1 }
 0x13b   : > { %v881_v48 = vpack.c.bf16 %v741_v47, %v738_v44  ;;  %v4799_v47 = vld [vmem:[#allocation2 + $0x120] ss:$16 sps:$4 sm:$0xff]  }
 0x13c   : > { %v4361_v51 = vpop.f32.mrb[8].mxu0  ;;  %1702 = vmatpush1.bf16.msra.mxu1 %v899_v50  ;;  %v4781_v50 = vld [vmem:[#allocation2 + $0x60] ss:$16 sps:$4 sm:$0xff]  }
 0x13d   : > { %v642_v52 = vpop.f32.mrb[9].mxu0  ;;  %1703 = vmatprep.subr.bf16.mxu1 %v5290_v20  ;;  %v913_v49 = vmax.bf16 %v5290_v20, %v881_v48 }
 0x13e   : > { %v4362_v54 = vpop.f32.mrb[10].mxu0 }
 0x13f   : > { %v870_v55 = vpack.c.bf16 %v4362_v54, %v4361_v51  ;;  %v645_v56 = vpop.f32.mrb[11].mxu0  ;;  %v4389_v51 = vpop.f32.mrb[4].mxu1 }
 0x140   : > { %v869_v57 = vpack.c.bf16 %v645_v56, %v642_v52  ;;  %1704 = vmatpush1.bf16.msra.mxu1 %v900_v53  ;;  %v4782_v52 = vld [vmem:[#allocation2 + $0x84] ss:$16 sps:$4 sm:$0xff]   ;;  %v914_v53 = vmax.bf16 %v5290_v20, %v882_v46  ;;  %v754_v54 = vpop.f32.mrb[5].mxu1 }
 0x141   : > { %1705 = vmatprep.subr.bf16.mxu1 %v5290_v20  ;;  %v902_v61 = vmax.bf16 %v5290_v20, %v870_v55  ;;  %v4390_v55 = vpop.f32.mrb[6].mxu1 }
 0x142   : > { %v901_v58 = vmax.bf16 %v5290_v20, %v869_v57  ;;  %v884_v56 = vpack.c.bf16 %v4390_v55, %v4389_v51  ;;  %v757_v57 = vpop.f32.mrb[7].mxu1 }
 0x144   : > { %v4365_v59 = vpop.f32.mrb[12].mxu0  ;;  %1706 = vmatpush1.bf16.msra.mxu1 %v901_v58  ;;  %v883_v58 = vpack.c.bf16 %v757_v57, %v754_v54  ;;  %v4802_v57 = vld [vmem:[#allocation2 + $0x140] ss:$16 sps:$4 sm:$0xff]  }
 0x145   : > { %v658_v60 = vpop.f32.mrb[13].mxu0  ;;  %1707 = vmatprep.subr.bf16.mxu1 %v5290_v20 }
 0x146   : > { %v4366_v62 = vpop.f32.mrb[14].mxu0 }
 0x147   : > { %v872_v63 = vpack.c.bf16 %v4366_v62, %v4365_v59  ;;  %v661_v0 = vpop.f32.mrb[15].mxu0  ;;  %v915_v59 = vmax.bf16 %v5290_v20, %v883_v58  ;;  %v4785_v62 = vld [vmem:[#allocation2 + $0xa4] ss:$16 sps:$4 sm:$0xff]  }
 0x148   : > { %v871_v1 = vpack.c.bf16 %v661_v0, %v658_v60  ;;  %1708 = vmatpush1.bf16.msra.mxu1 %v902_v61  ;;  %v4784_v60 = vld [vmem:[#allocation2 + $0x80] ss:$16 sps:$4 sm:$0xff]   ;;  %v4393_v61 = vpop.f32.mrb[8].mxu1  ;;  %v4803_v58 = vld [vmem:[#allocation2 + $0x164] ss:$16 sps:$4 sm:$0xff]  }
 0x149   : > { %1709 = vmatprep.subr.bf16.mxu1 %v5290_v20  ;;  %v904_v5 = vmax.bf16 %v5290_v20, %v872_v63  ;;  %v916_v63 = vmax.bf16 %v5290_v20, %v884_v56  ;;  %v770_v0 = vpop.f32.mrb[9].mxu1 }
 0x14a   : > { %v903_v2 = vmax.bf16 %v5290_v20, %v871_v1  ;;  %v4394_v1 = vpop.f32.mrb[10].mxu1 }
 0x14c   : > { %v4369_v3 = vpop.f32.mrb[16].mxu0  ;;  %1710 = vmatpush1.bf16.msra.mxu1 %v903_v2  ;;  %v886_v2 = vpack.c.bf16 %v4394_v1, %v4393_v61  ;;  %v4806_v61 = vld [vmem:[#allocation2 + $0x184] ss:$16 sps:$4 sm:$0xff]  }
 0x14d   : > { %v674_v4 = vpop.f32.mrb[17].mxu0  ;;  %1711 = vmatprep.subr.bf16.mxu1 %v5290_v20  ;;  %v4812_v1 = vld [vmem:[#allocation2 + $0x1c4] ss:$16 sps:$4 sm:$0xff]  }
 0x14e   : > { %v4370_v6 = vpop.f32.mrb[18].mxu0 }
 0x14f   : > { %v874_v7 = vpack.c.bf16 %v4370_v6, %v4369_v3  ;;  %v677_v8 = vpop.f32.mrb[19].mxu0  ;;  %v773_v3 = vpop.f32.mrb[11].mxu1  ;;  %v4787_v6 = vld [vmem:[#allocation2 + $0xa0] ss:$16 sps:$4 sm:$0xff]  }
 0x150   : > { %v873_v9 = vpack.c.bf16 %v677_v8, %v674_v4  ;;  %1712 = vmatpush1.bf16.msra.mxu1 %v904_v5  ;;  %v885_v4 = vpack.c.bf16 %v773_v3, %v770_v0  ;;  %v4788_v8 = vld [vmem:[#allocation2 + $0xc4] ss:$16 sps:$4 sm:$0xff]   ;;  %v4811_v0 = vld [vmem:[#allocation2 + $0x1a0] ss:$16 sps:$4 sm:$0xff]  }
 0x151   : > { %1713 = vmatprep.subr.bf16.mxu1 %v5290_v20  ;;  %v906_v13 = vmax.bf16 %v5290_v20, %v874_v7  ;;  %v4397_v7 = vpop.f32.mrb[12].mxu1  ;;  %v4815_v3 = vld [vmem:[#allocation2 + $0x1e4] ss:$16 sps:$4 sm:$0xff]  }
 0x152   : > { %v905_v10 = vmax.bf16 %v5290_v20, %v873_v9  ;;  %v917_v5 = vmax.bf16 %v5290_v20, %v885_v4  ;;  %v918_v9 = vmax.bf16 %v5290_v20, %v886_v2  ;;  %v4814_v2 = vld [vmem:[#allocation2 + $0x1c0] ss:$16 sps:$4 sm:$0xff]  }
 0x153   : > { %v4817_v4 = vld [vmem:[#allocation2 + $0x1e0] ss:$16 sps:$4 sm:$0xff]  }
 0x154   : > { %v4373_v11 = vpop.f32.mrb[20].mxu0  ;;  %1714 = vmatpush1.bf16.msra.mxu1 %v905_v10  ;;  %v786_v10 = vpop.f32.mrb[13].mxu1 }
 0x155   : > { %v690_v12 = vpop.f32.mrb[21].mxu0  ;;  %1715 = vmatprep.subr.bf16.mxu1 %v5290_v20 }
 0x156   : > { %v4374_v14 = vpop.f32.mrb[22].mxu0 }
 0x157   : > { %v876_v15 = vpack.c.bf16 %v4374_v14, %v4373_v11  ;;  %v693_v16 = vpop.f32.mrb[23].mxu0  ;;  %v4398_v11 = vpop.f32.mrb[14].mxu1 }
 0x158   : > { %v875_v17 = vpack.c.bf16 %v693_v16, %v690_v12  ;;  %1716 = vmatpush1.bf16.msra.mxu1 %v906_v13  ;;  %v888_v12 = vpack.c.bf16 %v4398_v11, %v4397_v7  ;;  %v789_v13 = vpop.f32.mrb[15].mxu1  ;;  %v4790_v16 = vld [vmem:[#allocation2 + $0xc0] ss:$16 sps:$4 sm:$0xff]   ;;  %v4821_v7 = vld [vmem:[#allocation2 + $0x224] ss:$16 sps:$4 sm:$0xff]  }
 0x159   : > { %1717 = vmatprep.subr.bf16.mxu1 %v5290_v20  ;;  %v908_v22 = vmax.bf16 %v5290_v20, %v876_v15  ;;  %v887_v14 = vpack.c.bf16 %v789_v13, %v786_v10  ;;  %v4826_v10 = vld [vmem:[#allocation2 + $0x240] ss:$16 sps:$4 sm:$0xff]   ;;  %v4827_v11 = vld [vmem:[#allocation2 + $0x264] ss:$16 sps:$4 sm:$0xff]  }
 0x15a   : > { %v907_v18 = vmax.bf16 %v5290_v20, %v875_v17  ;;  %v4401_v17 = vpop.f32.mrb[16].mxu1  ;;  %v4830_v13 = vld [vmem:[#allocation2 + $0x284] ss:$16 sps:$4 sm:$0xff]  }
 0x15b   : > { %v919_v15 = vmax.bf16 %v5290_v20, %v887_v14  ;;  %v4832_v14 = vld [vmem:[#allocation2 + $0x280] ss:$16 sps:$4 sm:$0xff]  }
 0x15c   : > { %v4377_v19 = vpop.f32.mrb[24].mxu0  ;;  %1718 = vmatpush1.bf16.msra.mxu1 %v907_v18  ;;  %v4791_v18 = vld [vmem:[#allocation2 + $0xe4] ss:$16 sps:$4 sm:$0xff]  }
 0x15d   : > { %v706_v21 = vpop.f32.mrb[25].mxu0  ;;  %1719 = vmatprep.subr.bf16.mxu1 %v5290_v20 }
 0x15e   : > { %v4378_v23 = vpop.f32.mrb[26].mxu0 }
 0x15f   : > { %v878_v24 = vpack.c.bf16 %v4378_v23, %v4377_v19  ;;  %v709_v25 = vpop.f32.mrb[27].mxu0  ;;  %v920_v19 = vmax.bf16 %v5290_v20, %v888_v12  ;;  %v4829_v12 = vld [vmem:[#allocation2 + $0x260] ss:$16 sps:$4 sm:$0xff]  }
 0x160   : > { %v877_v26 = vpack.c.bf16 %v709_v25, %v706_v21  ;;  %1720 = vmatpush1.bf16.msra.mxu1 %v908_v22  ;;  %v802_v21 = vpop.f32.mrb[17].mxu1 }
 0x161   : > { %1721 = vmatprep.subr.bf16.mxu1 %v5290_v20  ;;  %v910_v30 = vmax.bf16 %v5290_v20, %v878_v24  ;;  %v4402_v22 = vpop.f32.mrb[18].mxu1 }
 0x162   : > { %v909_v27 = vmax.bf16 %v5290_v20, %v877_v26  ;;  %v890_v23 = vpack.c.bf16 %v4402_v22, %v4401_v17  ;;  %v805_v24 = vpop.f32.mrb[19].mxu1  ;;  %v4836_v17 = vld [vmem:[#allocation2 + $0x2c4] ss:$16 sps:$4 sm:$0xff]  }
 0x163   : > { %v889_v25 = vpack.c.bf16 %v805_v24, %v802_v21  ;;  %v4841_v21 = vld [vmem:[#allocation2 + $0x2e0] ss:$16 sps:$4 sm:$0xff]   ;;  %v4842_v22 = vld [vmem:[#allocation2 + $0x304] ss:$16 sps:$4 sm:$0xff]  }
 0x164   : > { %v4381_v28 = vpop.f32.mrb[28].mxu0  ;;  %1722 = vmatpush1.bf16.msra.mxu1 %v909_v27  ;;  %v4793_v27 = vld [vmem:[#allocation2 + $0xe0] ss:$16 sps:$4 sm:$0xff]   ;;  %v4845_v24 = vld [vmem:[#allocation2 + $0x324] ss:$16 sps:$4 sm:$0xff]  }
 0x165   : > { %v722_v29 = vpop.f32.mrb[29].mxu0  ;;  %1723 = vmatprep.subr.bf16.mxu1 %v5290_v20  ;;  %v921_v26 = vmax.bf16 %v5290_v20, %v889_v25  ;;  %v4847_v25 = vld [vmem:[#allocation2 + $0x320] ss:$16 sps:$4 sm:$0xff]  }
 0x166   : > { %v4382_v31 = vpop.f32.mrb[30].mxu0 }
 0x167   : > { %v880_v32 = vpack.c.bf16 %v4382_v31, %v4381_v28  ;;  %v725_v33 = vpop.f32.mrb[31].mxu0  ;;  %v4405_v28 = vpop.f32.mrb[20].mxu1 }
 0x168   : > { %v879_v34 = vpack.c.bf16 %v725_v33, %v722_v29  ;;  %1724 = vmatpush1.bf16.msra.mxu1 %v910_v30  ;;  %v4794_v29 = vld [vmem:[#allocation2 + $0x104] ss:$16 sps:$4 sm:$0xff]   ;;  %v922_v30 = vmax.bf16 %v5290_v20, %v890_v23  ;;  %v818_v31 = vpop.f32.mrb[21].mxu1  ;;  %v4844_v23 = vld [vmem:[#allocation2 + $0x300] ss:$16 sps:$4 sm:$0xff]  }
 0x169   : > { %1725 = vmatprep.subr.bf16.mxu1 %v5290_v20  ;;  %v912_v36 = vmax.bf16 %v5290_v20, %v880_v32  ;;  %v4406_v32 = vpop.f32.mrb[22].mxu1 }
 0x16a   : > { %v911_v35 = vmax.bf16 %v5290_v20, %v879_v34  ;;  %v892_v33 = vpack.c.bf16 %v4406_v32, %v4405_v28  ;;  %v821_v34 = vpop.f32.mrb[23].mxu1  ;;  %v4851_v28 = vld [vmem:[#allocation2 + $0x364] ss:$16 sps:$4 sm:$0xff]  }
 0x16b   : > { %v4857_v32 = vld [vmem:[#allocation2 + $0x3a4] ss:$16 sps:$4 sm:$0xff]  }
 0x16c   : > { %1726 = vmatpush1.bf16.msra.mxu1 %v911_v35  ;;  %v891_v35 = vpack.c.bf16 %v821_v34, %v818_v31  ;;  %v4856_v31 = vld [vmem:[#allocation2 + $0x380] ss:$16 sps:$4 sm:$0xff]   ;;  %v4860_v34 = vld [vmem:[#allocation2 + $0x3c4] ss:$16 sps:$4 sm:$0xff]  }
 0x16d   : > { %1727 = vmatprep.subr.bf16.mxu1 %v5290_v20 }
 0x170   : > { %1728 = vmatpush1.bf16.msra.mxu1 %v912_v36  ;;  %v923_v36 = vmax.bf16 %v5290_v20, %v891_v35  ;;  %v4862_v35 = vld [vmem:[#allocation2 + $0x3c0] ss:$16 sps:$4 sm:$0xff]  }
 0x171   : > { %1986 = vmatprep.subr.bf16.mxu1 %v5290_v20 }
 0x173   : > { %1730 = vmatmul.mubr.bf16.vlgmr.msra.gmra.mrb[32].mxu1 %v4770_v37  ;;  %v4796_v37 = vld [vmem:[#allocation2 + $0x100] ss:$16 sps:$4 sm:$0xff]  }
 0x174   : > { %1737 = vmatprep.mubr.bf16.mxu1 %v4773_v38  ;;  %1987 = vmatpush1.bf16.msra.mxu1 %v913_v49  ;;  %v4409_v38 = vpop.f32.mrb[24].mxu1  ;;  %v4800_v49 = vld [vmem:[#allocation2 + $0x144] ss:$16 sps:$4 sm:$0xff]  }
 0x175   : > { %1988 = vmatprep.subr.bf16.mxu1 %v5290_v20 }
 0x178   : > { %1989 = vmatpush1.bf16.msra.mxu1 %v914_v53 }
 0x179   : > { %1990 = vmatprep.subr.bf16.mxu1 %v5290_v20 }
 0x17b   : > { %1738 = vmatmul.mubr.bf16.gmra.mrb[36].mxu1 %v4775_v39  ;;  %v4797_v39 = vld [vmem:[#allocation2 + $0x124] ss:$16 sps:$4 sm:$0xff]  }
 0x17c   : > { %1745 = vmatprep.mubr.bf16.mxu1 %v4776_v40  ;;  %1991 = vmatpush1.bf16.msra.mxu1 %v915_v59  ;;  %v924_v40 = vmax.bf16 %v5290_v20, %v892_v33  ;;  %v4859_v33 = vld [vmem:[#allocation2 + $0x3a0] ss:$16 sps:$4 sm:$0xff]  }
 0x17d   : > { %1992 = vmatprep.subr.bf16.mxu1 %v5290_v20 }
 0x180   : > { %1993 = vmatpush1.bf16.msra.mxu1 %v916_v63  ;;  %v4809_v63 = vld [vmem:[#allocation2 + $0x1a4] ss:$16 sps:$4 sm:$0xff]  }
 0x181   : > { %1994 = vmatprep.subr.bf16.mxu1 %v5290_v20 }
 0x183   : > { %1746 = vmatmul.mubr.bf16.gmra.mrb[40].mxu1 %v4778_v41  ;;  %v834_v41 = vpop.f32.mrb[25].mxu1 }
 0x184   : > { %1753 = vmatprep.mubr.bf16.mxu1 %v4779_v43  ;;  %1995 = vmatpush1.bf16.msra.mxu1 %v917_v5  ;;  %v4410_v42 = vpop.f32.mrb[26].mxu1  ;;  %v4818_v5 = vld [vmem:[#allocation2 + $0x204] ss:$16 sps:$4 sm:$0xff]  }
 0x185   : > { %1996 = vmatprep.subr.bf16.mxu1 %v5290_v20  ;;  %v894_v43 = vpack.c.bf16 %v4410_v42, %v4409_v38  ;;  %v837_v44 = vpop.f32.mrb[27].mxu1  ;;  %v4868_v38 = vld [vmem:[#allocation2 + $0xc] ss:$16 sps:$4 sm:$0xff]  }
 0x186   : > { %v893_v45 = vpack.c.bf16 %v837_v44, %v834_v41  ;;  %v4413_v48 = vpop.f32.mrb[28].mxu1  ;;  %v4871_v41 = vld [vmem:[#allocation2 + $0x28] ss:$16 sps:$4 sm:$0xff]   ;;  %v4872_v42 = vld [vmem:[#allocation2 + $0x4c] ss:$16 sps:$4 sm:$0xff]  }
 0x187   : > { %v850_v51 = vpop.f32.mrb[29].mxu1  ;;  %v4875_v44 = vld [vmem:[#allocation2 + $0x6c] ss:$16 sps:$4 sm:$0xff]  }
 0x188   : > { %1997 = vmatpush1.bf16.msra.mxu1 %v918_v9  ;;  %v925_v46 = vmax.bf16 %v5290_v20, %v893_v45  ;;  %v4824_v9 = vld [vmem:[#allocation2 + $0x244] ss:$16 sps:$4 sm:$0xff]   ;;  %v4877_v45 = vld [vmem:[#allocation2 + $0x68] ss:$16 sps:$4 sm:$0xff]  }
 0x189   : > { %1998 = vmatprep.subr.bf16.mxu1 %v5290_v20 }
 0x18b   : > { %1754 = vmatmul.mubr.bf16.gmra.mrb[44].mxu1 %v4781_v50  ;;  %v926_v50 = vmax.bf16 %v5290_v20, %v894_v43  ;;  %v4874_v43 = vld [vmem:[#allocation2 + $0x48] ss:$16 sps:$4 sm:$0xff]  }
 0x18c   : > { %1761 = vmatprep.mubr.bf16.mxu1 %v4782_v52  ;;  %1999 = vmatpush1.bf16.msra.mxu1 %v919_v15  ;;  %v4414_v52 = vpop.f32.mrb[30].mxu1  ;;  %v4833_v15 = vld [vmem:[#allocation2 + $0x2a4] ss:$16 sps:$4 sm:$0xff]  }
 0x18d   : > { %2000 = vmatprep.subr.bf16.mxu1 %v5290_v20  ;;  %v896_v53 = vpack.c.bf16 %v4414_v52, %v4413_v48  ;;  %v853_v54 = vpop.f32.mrb[31].mxu1  ;;  %v4881_v48 = vld [vmem:[#allocation2 + $0xac] ss:$16 sps:$4 sm:$0xff]  }
 0x18e   : > { %v895_v55 = vpack.c.bf16 %v853_v54, %v850_v51  ;;  %v4886_v51 = vld [vmem:[#allocation2 + $0xc8] ss:$16 sps:$4 sm:$0xff]   ;;  %v4887_v52 = vld [vmem:[#allocation2 + $0xec] ss:$16 sps:$4 sm:$0xff]  }
 0x18f   : > { %v928_v59 = vmax.bf16 %v5290_v20, %v896_v53  ;;  %v4889_v53 = vld [vmem:[#allocation2 + $0xe8] ss:$16 sps:$4 sm:$0xff]   ;;  %v4890_v54 = vld [vmem:[#allocation2 + $0x10c] ss:$16 sps:$4 sm:$0xff]  }
 0x190   : > { %2001 = vmatpush1.bf16.msra.mxu1 %v920_v19  ;;  %v927_v56 = vmax.bf16 %v5290_v20, %v895_v55  ;;  %v4839_v19 = vld [vmem:[#allocation2 + $0x2e4] ss:$16 sps:$4 sm:$0xff]   ;;  %v4892_v55 = vld [vmem:[#allocation2 + $0x108] ss:$16 sps:$4 sm:$0xff]  }
 0x191   : > { %2002 = vmatprep.subr.bf16.mxu1 %v5290_v20 }
 0x193   : > { %1762 = vmatmul.mubr.bf16.gmra.mrb[48].mxu1 %v4784_v60  ;;  %v4805_v60 = vld [vmem:[#allocation2 + $0x160] ss:$16 sps:$4 sm:$0xff]  }
 0x194   : > { %1769 = vmatprep.mubr.bf16.mxu1 %v4785_v62  ;;  %2003 = vmatpush1.bf16.msra.mxu1 %v921_v26  ;;  %v4808_v62 = vld [vmem:[#allocation2 + $0x180] ss:$16 sps:$4 sm:$0xff]   ;;  %v4848_v26 = vld [vmem:[#allocation2 + $0x344] ss:$16 sps:$4 sm:$0xff]  }
 0x195   : > { %2004 = vmatprep.subr.bf16.mxu1 %v5290_v20 }
 0x198   : > { %2005 = vmatpush1.bf16.msra.mxu1 %v922_v30  ;;  %v4854_v30 = vld [vmem:[#allocation2 + $0x384] ss:$16 sps:$4 sm:$0xff]  }
 0x199   : > { %2006 = vmatprep.subr.bf16.mxu1 %v5290_v20 }
 0x19b   : > { %1770 = vmatmul.mubr.bf16.gmra.mrb[52].mxu1 %v4787_v6  ;;  %v4820_v6 = vld [vmem:[#allocation2 + $0x200] ss:$16 sps:$4 sm:$0xff]  }
 0x19c   : > { %1777 = vmatprep.mubr.bf16.mxu1 %v4788_v8  ;;  %2007 = vmatpush1.bf16.msra.mxu1 %v923_v36  ;;  %v4823_v8 = vld [vmem:[#allocation2 + $0x220] ss:$16 sps:$4 sm:$0xff]   ;;  %v4863_v36 = vld [vmem:[#allocation2 + $0x3e4] ss:$16 sps:$4 sm:$0xff]  }
 0x19d   : > { %2008 = vmatprep.subr.bf16.mxu1 %v5290_v20 }
 0x1a0   : > { %2009 = vmatpush1.bf16.msra.mxu1 %v924_v40  ;;  %v4869_v40 = vld [vmem:[#allocation2 + $0x2c] ss:$16 sps:$4 sm:$0xff]  }
 0x1a1   : > { %2010 = vmatprep.subr.bf16.mxu1 %v5290_v20 }
 0x1a3   : > { %1778 = vmatmul.mubr.bf16.gmra.mrb[56].mxu1 %v4790_v16  ;;  %v4835_v16 = vld [vmem:[#allocation2 + $0x2a0] ss:$16 sps:$4 sm:$0xff]  }
 0x1a4   : > { %1785 = vmatprep.mubr.bf16.mxu1 %v4791_v18  ;;  %2011 = vmatpush1.bf16.msra.mxu1 %v925_v46  ;;  %v4838_v18 = vld [vmem:[#allocation2 + $0x2c0] ss:$16 sps:$4 sm:$0xff]   ;;  %v4878_v46 = vld [vmem:[#allocation2 + $0x8c] ss:$16 sps:$4 sm:$0xff]  }
 0x1a5   : > { %2012 = vmatprep.subr.bf16.mxu1 %v5290_v20 }
 0x1a8   : > { %2013 = vmatpush1.bf16.msra.mxu1 %v926_v50  ;;  %v4884_v50 = vld [vmem:[#allocation2 + $0xcc] ss:$16 sps:$4 sm:$0xff]  }
 0x1a9   : > { %2014 = vmatprep.subr.bf16.mxu1 %v5290_v20 }
 0x1ab   : > { %1786 = vmatmul.mubr.bf16.gmra.mrb[60].mxu1 %v4793_v27  ;;  %v4850_v27 = vld [vmem:[#allocation2 + $0x340] ss:$16 sps:$4 sm:$0xff]  }
 0x1ac   : > { %1793 = vmatprep.mubr.bf16.mxu1 %v4794_v29  ;;  %2015 = vmatpush1.bf16.msra.mxu1 %v927_v56  ;;  %v4853_v29 = vld [vmem:[#allocation2 + $0x360] ss:$16 sps:$4 sm:$0xff]   ;;  %v4893_v56 = vld [vmem:[#allocation2 + $0x12c] ss:$16 sps:$4 sm:$0xff]  }
 0x1ad   : > { %2016 = vmatprep.subr.bf16.mxu1 %v5290_v20 }
 0x1b0   : > { %2017 = vmatpush1.bf16.msra.mxu1 %v928_v59  ;;  %v4898_v59 = vld [vmem:[#allocation2 + $0x148] ss:$16 sps:$4 sm:$0xff]  }
 0x1b3   : > { %1794 = vmatmul.mubr.bf16.gmra.mrb[64].mxu1 %v4796_v37  ;;  %v4865_v37 = vld [vmem:[#allocation2 + $0x3e0] ss:$16 sps:$4 sm:$0xff]  }
 0x1b4   : > { %1801 = vmatprep.mubr.bf16.mxu1 %v4797_v39  ;;  %v4866_v39 = vld [vmem:[#allocation2 + $0x8] ss:$16 sps:$4 sm:$0xff]  }
 0x1bb   : > { %1802 = vmatmul.mubr.bf16.gmra.mrb[68].mxu1 %v4799_v47  ;;  %v4880_v47 = vld [vmem:[#allocation2 + $0x88] ss:$16 sps:$4 sm:$0xff]  }
 0x1bc   : > { %1809 = vmatprep.mubr.bf16.mxu1 %v4800_v49  ;;  %v4883_v49 = vld [vmem:[#allocation2 + $0xa8] ss:$16 sps:$4 sm:$0xff]  }
 0x1c3   : > { %1810 = vmatmul.mubr.bf16.gmra.mrb[72].mxu1 %v4802_v57  ;;  %v4895_v57 = vld [vmem:[#allocation2 + $0x128] ss:$16 sps:$4 sm:$0xff]  }
 0x1c4   : > { %1817 = vmatprep.mubr.bf16.mxu1 %v4803_v58  ;;  %v4896_v58 = vld [vmem:[#allocation2 + $0x14c] ss:$16 sps:$4 sm:$0xff]  }
 0x1cb   : > { %1818 = vmatmul.mubr.bf16.gmra.mrb[76].mxu1 %v4805_v60  ;;  %v4899_v60 = vld [vmem:[#allocation2 + $0x16c] ss:$16 sps:$4 sm:$0xff]  }
 0x1cc   : > { %1825 = vmatprep.mubr.bf16.mxu1 %v4806_v61  ;;  %v4901_v61 = vld [vmem:[#allocation2 + $0x168] ss:$16 sps:$4 sm:$0xff]  }
 0x1d3   : > { %1826 = vmatmul.mubr.bf16.gmra.mrb[80].mxu1 %v4808_v62  ;;  %v4902_v62 = vld [vmem:[#allocation2 + $0x18c] ss:$16 sps:$4 sm:$0xff]  }
 0x1d4   : > { %1833 = vmatprep.mubr.bf16.mxu1 %v4809_v63  ;;  %v4904_v63 = vld [vmem:[#allocation2 + $0x188] ss:$16 sps:$4 sm:$0xff]  }
 0x1db   : > { %1834 = vmatmul.mubr.bf16.gmra.mrb[84].mxu1 %v4811_v0  ;;  %v4905_v0 = vld [vmem:[#allocation2 + $0x1ac] ss:$16 sps:$4 sm:$0xff]  }
 0x1dc   : > { %1841 = vmatprep.mubr.bf16.mxu1 %v4812_v1  ;;  %v4907_v1 = vld [vmem:[#allocation2 + $0x1a8] ss:$16 sps:$4 sm:$0xff]  }
 0x1e3   : > { %1842 = vmatmul.mubr.bf16.gmra.mrb[88].mxu1 %v4814_v2  ;;  %v4908_v2 = vld [vmem:[#allocation2 + $0x1cc] ss:$16 sps:$4 sm:$0xff]  }
 0x1e4   : > { %1849 = vmatprep.mubr.bf16.mxu1 %v4815_v3  ;;  %v4910_v3 = vld [vmem:[#allocation2 + $0x1c8] ss:$16 sps:$4 sm:$0xff]  }
 0x1eb   : > { %1850 = vmatmul.mubr.bf16.gmra.mrb[92].mxu1 %v4817_v4  ;;  %v4911_v4 = vld [vmem:[#allocation2 + $0x1ec] ss:$16 sps:$4 sm:$0xff]  }
 0x1ec   : > { %1857 = vmatprep.mubr.bf16.mxu1 %v4818_v5  ;;  %v4913_v5 = vld [vmem:[#allocation2 + $0x1e8] ss:$16 sps:$4 sm:$0xff]  }
 0x1f3   : > { %1858 = vmatmul.mubr.bf16.gmra.mrb[96].mxu1 %v4820_v6  ;;  %v4914_v6 = vld [vmem:[#allocation2 + $0x20c] ss:$16 sps:$4 sm:$0xff]  }
 0x1f4   : > { %1865 = vmatprep.mubr.bf16.mxu1 %v4821_v7  ;;  %v4916_v7 = vld [vmem:[#allocation2 + $0x208] ss:$16 sps:$4 sm:$0xff]  }
 0x1fb   : > { %1866 = vmatmul.mubr.bf16.gmra.mrb[100].mxu1 %v4823_v8  ;;  %v4917_v8 = vld [vmem:[#allocation2 + $0x22c] ss:$16 sps:$4 sm:$0xff]  }
 0x1fc   : > { %1873 = vmatprep.mubr.bf16.mxu1 %v4824_v9  ;;  %v4919_v9 = vld [vmem:[#allocation2 + $0x228] ss:$16 sps:$4 sm:$0xff]  }
 0x203   : > { %1874 = vmatmul.mubr.bf16.gmra.mrb[104].mxu1 %v4826_v10  ;;  %v4920_v10 = vld [vmem:[#allocation2 + $0x24c] ss:$16 sps:$4 sm:$0xff]  }
 0x204   : > { %1881 = vmatprep.mubr.bf16.mxu1 %v4827_v11  ;;  %v4922_v11 = vld [vmem:[#allocation2 + $0x248] ss:$16 sps:$4 sm:$0xff]  }
 0x20b   : > { %1882 = vmatmul.mubr.bf16.gmra.mrb[108].mxu1 %v4829_v12  ;;  %v4923_v12 = vld [vmem:[#allocation2 + $0x26c] ss:$16 sps:$4 sm:$0xff]  }
 0x20c   : > { %1889 = vmatprep.mubr.bf16.mxu1 %v4830_v13  ;;  %v4925_v13 = vld [vmem:[#allocation2 + $0x268] ss:$16 sps:$4 sm:$0xff]  }
 0x213   : > { %1890 = vmatmul.mubr.bf16.gmra.mrb[112].mxu1 %v4832_v14  ;;  %v4926_v14 = vld [vmem:[#allocation2 + $0x28c] ss:$16 sps:$4 sm:$0xff]  }
 0x214   : > { %1897 = vmatprep.mubr.bf16.mxu1 %v4833_v15  ;;  %v4928_v15 = vld [vmem:[#allocation2 + $0x288] ss:$16 sps:$4 sm:$0xff]  }
 0x21b   : > { %1898 = vmatmul.mubr.bf16.gmra.mrb[116].mxu1 %v4835_v16  ;;  %v4929_v16 = vld [vmem:[#allocation2 + $0x2ac] ss:$16 sps:$4 sm:$0xff]  }
 0x21c   : > { %1905 = vmatprep.mubr.bf16.mxu1 %v4836_v17  ;;  %v4931_v17 = vld [vmem:[#allocation2 + $0x2a8] ss:$16 sps:$4 sm:$0xff]  }
 0x223   : > { %1906 = vmatmul.mubr.bf16.gmra.mrb[120].mxu1 %v4838_v18  ;;  %v4932_v18 = vld [vmem:[#allocation2 + $0x2cc] ss:$16 sps:$4 sm:$0xff]  }
 0x224   : > { %1913 = vmatprep.mubr.bf16.mxu1 %v4839_v19  ;;  %v4934_v19 = vld [vmem:[#allocation2 + $0x2c8] ss:$16 sps:$4 sm:$0xff]  }
 0x22b   : > { %1914 = vmatmul.mubr.bf16.gmra.mrb[124].mxu1 %v4841_v21  ;;  %v4935_v21 = vld [vmem:[#allocation2 + $0x2ec] ss:$16 sps:$4 sm:$0xff]  }
 0x22c   : > { %1921 = vmatprep.mubr.bf16.mxu1 %v4842_v22  ;;  %v4937_v22 = vld [vmem:[#allocation2 + $0x2e8] ss:$16 sps:$4 sm:$0xff]  }
 0x233   : > { %1922 = vmatmul.mubr.bf16.gmra.mrb[128].mxu1 %v4844_v23  ;;  %v4938_v23 = vld [vmem:[#allocation2 + $0x30c] ss:$16 sps:$4 sm:$0xff]  }
 0x234   : > { %1929 = vmatprep.mubr.bf16.mxu1 %v4845_v24  ;;  %v4940_v24 = vld [vmem:[#allocation2 + $0x308] ss:$16 sps:$4 sm:$0xff]  }
 0x23b   : > { %1930 = vmatmul.mubr.bf16.gmra.mrb[132].mxu1 %v4847_v25  ;;  %v4941_v25 = vld [vmem:[#allocation2 + $0x32c] ss:$16 sps:$4 sm:$0xff]  }
 0x23c   : > { %1937 = vmatprep.mubr.bf16.mxu1 %v4848_v26  ;;  %v4943_v26 = vld [vmem:[#allocation2 + $0x328] ss:$16 sps:$4 sm:$0xff]  }
 0x243   : > { %1938 = vmatmul.mubr.bf16.gmra.mrb[136].mxu1 %v4850_v27  ;;  %v4944_v27 = vld [vmem:[#allocation2 + $0x34c] ss:$16 sps:$4 sm:$0xff]  }
 0x244   : > { %1945 = vmatprep.mubr.bf16.mxu1 %v4851_v28  ;;  %v4946_v28 = vld [vmem:[#allocation2 + $0x348] ss:$16 sps:$4 sm:$0xff]  }
 0x24b   : > { %1946 = vmatmul.mubr.bf16.gmra.mrb[140].mxu1 %v4853_v29  ;;  %v4947_v29 = vld [vmem:[#allocation2 + $0x36c] ss:$16 sps:$4 sm:$0xff]  }
 0x24c   : > { %1953 = vmatprep.mubr.bf16.mxu1 %v4854_v30  ;;  %v4964_v30 = vld [vmem:[#allocation5 + $0x4] ss:$16 sps:$4 sm:$0xff]  }
 0x24d   : > { %3139 = vmatprep.mubr.bf16.mxu0 %v4964_v30 }
 0x253   : > { %1954 = vmatmul.mubr.bf16.gmra.mrb[144].mxu1 %v4856_v31 }
 0x254   : > { %1961 = vmatprep.mubr.bf16.mxu1 %v4857_v32 }
 0x25b   : > { %1962 = vmatmul.mubr.bf16.gmra.mrb[148].mxu1 %v4859_v33  ;;  %v4949_v33 = vld [vmem:[#allocation2 + $0x368] ss:$16 sps:$4 sm:$0xff]  }
 0x25c   : > { %1969 = vmatprep.mubr.bf16.mxu1 %v4860_v34 }
 0x263   : > { %1970 = vmatmul.mubr.bf16.gmra.mrb[152].mxu1 %v4862_v35  ;;  %v4950_v35 = vld [vmem:[#allocation2 + $0x38c] ss:$16 sps:$4 sm:$0xff]  }
 0x264   : > { %1977 = vmatprep.mubr.bf16.mxu1 %v4863_v36 }
 0x26b   : > { %1978 = vmatmul.mubr.bf16.gmra.mrb[156].mxu1 %v4865_v37 }
 0x26c   : > { %2018 = vmatprep.mubr.bf16.mxu1 %v4868_v38 }
 0x273   : > { %2019 = vmatmul.mubr.bf16.vlgmr.msra.gmra.mrb[32].mxu1 %v4866_v39 }
 0x274   : > { %2026 = vmatprep.mubr.bf16.mxu1 %v4869_v40 }
 0x27b   : > { %2027 = vmatmul.mubr.bf16.gmra.mrb[36].mxu1 %v4871_v41  ;;  %v4952_v41 = vld [vmem:[#allocation2 + $0x388] ss:$16 sps:$4 sm:$0xff]  }
 0x27c   : > { %2034 = vmatprep.mubr.bf16.mxu1 %v4872_v42 }
 0x283   : > { %2035 = vmatmul.mubr.bf16.gmra.mrb[40].mxu1 %v4874_v43  ;;  %v4953_v43 = vld [vmem:[#allocation2 + $0x3ac] ss:$16 sps:$4 sm:$0xff]  }
 0x284   : > { %2042 = vmatprep.mubr.bf16.mxu1 %v4875_v44 }
 0x28b   : > { %2043 = vmatmul.mubr.bf16.gmra.mrb[44].mxu1 %v4877_v45 }
 0x28c   : > { %2050 = vmatprep.mubr.bf16.mxu1 %v4878_v46 }
 0x293   : > { %2051 = vmatmul.mubr.bf16.gmra.mrb[48].mxu1 %v4880_v47 }
 0x294   : > { %2058 = vmatprep.mubr.bf16.mxu1 %v4881_v48 }
 0x29b   : > { %2059 = vmatmul.mubr.bf16.gmra.mrb[52].mxu1 %v4883_v49  ;;  %v4955_v49 = vld [vmem:[#allocation2 + $0x3a8] ss:$16 sps:$4 sm:$0xff]  }
 0x29c   : > { %2066 = vmatprep.mubr.bf16.mxu1 %v4884_v50 }
 0x2a3   : > { %2067 = vmatmul.mubr.bf16.gmra.mrb[56].mxu1 %v4886_v51  ;;  %v4956_v51 = vld [vmem:[#allocation2 + $0x3cc] ss:$16 sps:$4 sm:$0xff]  }
 0x2a4   : > { %2074 = vmatprep.mubr.bf16.mxu1 %v4887_v52 }
 0x2ab   : > { %2075 = vmatmul.mubr.bf16.gmra.mrb[60].mxu1 %v4889_v53 }
 0x2ac   : > { %2082 = vmatprep.mubr.bf16.mxu1 %v4890_v54 }
 0x2b3   : > { %2083 = vmatmul.mubr.bf16.gmra.mrb[64].mxu1 %v4892_v55 }
 0x2b4   : > { %2090 = vmatprep.mubr.bf16.mxu1 %v4893_v56 }
 0x2bb   : > { %2091 = vmatmul.mubr.bf16.gmra.mrb[68].mxu1 %v4895_v57  ;;  %v4958_v57 = vld [vmem:[#allocation2 + $0x3c8] ss:$16 sps:$4 sm:$0xff]  }
 0x2bc   : > { %2098 = vmatprep.mubr.bf16.mxu1 %v4896_v58 }
 0x2c3   : > { %2099 = vmatmul.mubr.bf16.gmra.mrb[72].mxu1 %v4898_v59  ;;  %v4959_v59 = vld [vmem:[#allocation2 + $0x3ec] ss:$16 sps:$4 sm:$0xff]  }
 0x2c4   : > { %2106 = vmatprep.mubr.bf16.mxu1 %v4899_v60 }
 0x2cb   : > { %2107 = vmatmul.mubr.bf16.gmra.mrb[76].mxu1 %v4901_v61 }
 0x2cc   : > { %2114 = vmatprep.mubr.bf16.mxu1 %v4902_v62 }
 0x2d3   : > { %2115 = vmatmul.mubr.bf16.gmra.mrb[80].mxu1 %v4904_v63 }
 0x2d4   : > { %2122 = vmatprep.mubr.bf16.mxu1 %v4905_v0 }
 0x2db   : > { %2123 = vmatmul.mubr.bf16.gmra.mrb[84].mxu1 %v4907_v1  ;;  %v4961_v1 = vld [vmem:[#allocation2 + $0x3e8] ss:$16 sps:$4 sm:$0xff]  }
 0x2dc   : > { %2130 = vmatprep.mubr.bf16.mxu1 %v4908_v2 }
 0x2e3   : > { %2131 = vmatmul.mubr.bf16.gmra.mrb[88].mxu1 %v4910_v3 }
 0x2e4   : > { %2138 = vmatprep.mubr.bf16.mxu1 %v4911_v4 }
 0x2eb   : > { %2139 = vmatmul.mubr.bf16.gmra.mrb[92].mxu1 %v4913_v5 }
 0x2ec   : > { %2146 = vmatprep.mubr.bf16.mxu1 %v4914_v6 }
 0x2f3   : > { %2147 = vmatmul.mubr.bf16.gmra.mrb[96].mxu1 %v4916_v7 }
 0x2f4   : > { %2154 = vmatprep.mubr.bf16.mxu1 %v4917_v8 }
 0x2fb   : > { %2155 = vmatmul.mubr.bf16.gmra.mrb[100].mxu1 %v4919_v9 }
 0x2fc   : > { %2162 = vmatprep.mubr.bf16.mxu1 %v4920_v10 }
 0x303   : > { %2163 = vmatmul.mubr.bf16.gmra.mrb[104].mxu1 %v4922_v11 }
 0x304   : > { %2170 = vmatprep.mubr.bf16.mxu1 %v4923_v12 }
 0x30b   : > { %2171 = vmatmul.mubr.bf16.gmra.mrb[108].mxu1 %v4925_v13 }
 0x30c   : > { %2178 = vmatprep.mubr.bf16.mxu1 %v4926_v14 }
 0x313   : > { %2179 = vmatmul.mubr.bf16.gmra.mrb[112].mxu1 %v4928_v15 }
 0x314   : > { %2186 = vmatprep.mubr.bf16.mxu1 %v4929_v16 }
 0x31b   : > { %2187 = vmatmul.mubr.bf16.gmra.mrb[116].mxu1 %v4931_v17 }
 0x31c   : > { %2194 = vmatprep.mubr.bf16.mxu1 %v4932_v18 }
 0x323   : > { %2195 = vmatmul.mubr.bf16.gmra.mrb[120].mxu1 %v4934_v19 }
 0x324   : > { %2202 = vmatprep.mubr.bf16.mxu1 %v4935_v21 }
 0x32b   : > { %2203 = vmatmul.mubr.bf16.gmra.mrb[124].mxu1 %v4937_v22 }
 0x32c   : > { %2210 = vmatprep.mubr.bf16.mxu1 %v4938_v23 }
 0x333   : > { %2211 = vmatmul.mubr.bf16.gmra.mrb[128].mxu1 %v4940_v24 }
 0x334   : > { %2218 = vmatprep.mubr.bf16.mxu1 %v4941_v25 }
 0x33b   : > { %2219 = vmatmul.mubr.bf16.gmra.mrb[132].mxu1 %v4943_v26 }
 0x33c   : > { %2226 = vmatprep.mubr.bf16.mxu1 %v4944_v27 }
 0x343   : > { %2227 = vmatmul.mubr.bf16.gmra.mrb[136].mxu1 %v4946_v28 }
 0x344   : > { %2234 = vmatprep.mubr.bf16.mxu1 %v4947_v29 }
 0x346   : > { %v2020_v31 = vpop.f32.mrb[32].mxu1 }
 0x347   : > { %v2022_v32 = vpop.f32.mrb[33].mxu1 }
 0x348   : > { %v2023_v34 = vpop.f32.mrb[34].mxu1 }
 0x349   : > { %v2275_v36 = vpack.c.bf16 %v2023_v34, %v2020_v31  ;;  %v2025_v37 = vpop.f32.mrb[35].mxu1 }
 0x34b   : > { %v2307_v38 = vmax.bf16 %v5290_v20, %v2275_v36  ;;  %2235 = vmatmul.mubr.bf16.gmra.mrb[140].mxu1 %v4949_v33 }
 0x34c   : > { %2242 = vmatprep.mubr.bf16.mxu1 %v4950_v35 }
 0x34d   : > { %3108 = vmatpush1.bf16.msra.mxu0 %v2307_v38 }
 0x34e   : > { %v2028_v39 = vpop.f32.mrb[36].mxu1  ;;  %3109 = vmatprep.subr.bf16.mxu0 %v5290_v20 }
 0x34f   : > { %v2030_v40 = vpop.f32.mrb[37].mxu1 }
 0x350   : > { %v2031_v42 = vpop.f32.mrb[38].mxu1 }
 0x351   : > { %v2276_v44 = vpack.c.bf16 %v2031_v42, %v2028_v39  ;;  %v2033_v45 = vpop.f32.mrb[39].mxu1 }
 0x353   : > { %v2308_v46 = vmax.bf16 %v5290_v20, %v2276_v44  ;;  %2243 = vmatmul.mubr.bf16.gmra.mrb[144].mxu1 %v4952_v41 }
 0x354   : > { %2250 = vmatprep.mubr.bf16.mxu1 %v4953_v43 }
 0x355   : > { %3110 = vmatpush1.bf16.msra.mxu0 %v2308_v46 }
 0x356   : > { %v2036_v47 = vpop.f32.mrb[40].mxu1  ;;  %3111 = vmatprep.subr.bf16.mxu0 %v5290_v20 }
 0x357   : > { %v2038_v48 = vpop.f32.mrb[41].mxu1 }
 0x358   : > { %v2039_v50 = vpop.f32.mrb[42].mxu1 }
 0x359   : > { %v2277_v52 = vpack.c.bf16 %v2039_v50, %v2036_v47  ;;  %v2041_v53 = vpop.f32.mrb[43].mxu1 }
 0x35b   : > { %v2309_v54 = vmax.bf16 %v5290_v20, %v2277_v52  ;;  %2251 = vmatmul.mubr.bf16.gmra.mrb[148].mxu1 %v4955_v49 }
 0x35c   : > { %2258 = vmatprep.mubr.bf16.mxu1 %v4956_v51 }
 0x35d   : > { %3112 = vmatpush1.bf16.msra.mxu0 %v2309_v54 }
 0x35e   : > { %v2044_v55 = vpop.f32.mrb[44].mxu1  ;;  %3113 = vmatprep.subr.bf16.mxu0 %v5290_v20 }
 0x35f   : > { %v2046_v56 = vpop.f32.mrb[45].mxu1 }
 0x360   : > { %v2047_v58 = vpop.f32.mrb[46].mxu1 }
 0x361   : > { %v2278_v60 = vpack.c.bf16 %v2047_v58, %v2044_v55  ;;  %v2049_v61 = vpop.f32.mrb[47].mxu1 }
 0x363   : > { %v2310_v62 = vmax.bf16 %v5290_v20, %v2278_v60  ;;  %2259 = vmatmul.mubr.bf16.gmra.mrb[152].mxu1 %v4958_v57 }
 0x364   : > { %2266 = vmatprep.mubr.bf16.mxu1 %v4959_v59 }
 0x365   : > { %3114 = vmatpush1.bf16.msra.mxu0 %v2310_v62 }
 0x366   : > { %v2052_v63 = vpop.f32.mrb[48].mxu1  ;;  %3115 = vmatprep.subr.bf16.mxu0 %v5290_v20 }
 0x367   : > { %v2054_v0 = vpop.f32.mrb[49].mxu1 }
 0x368   : > { %v2055_v2 = vpop.f32.mrb[50].mxu1 }
 0x369   : > { %v2279_v3 = vpack.c.bf16 %v2055_v2, %v2052_v63  ;;  %v2057_v4 = vpop.f32.mrb[51].mxu1 }
 0x36b   : > { %v2311_v5 = vmax.bf16 %v5290_v20, %v2279_v3  ;;  %2267 = vmatmul.mubr.bf16.gmra.mrb[156].mxu1 %v4961_v1 }
 0x36d   : > { %3116 = vmatpush1.bf16.msra.mxu0 %v2311_v5 }
 0x36e   : > { %v2060_v6 = vpop.f32.mrb[52].mxu1  ;;  %3117 = vmatprep.subr.bf16.mxu0 %v5290_v20 }
 0x36f   : > { %v2062_v7 = vpop.f32.mrb[53].mxu1 }
 0x370   : > { %v2063_v8 = vpop.f32.mrb[54].mxu1 }
 0x371   : > { %v2280_v9 = vpack.c.bf16 %v2063_v8, %v2060_v6  ;;  %v2065_v10 = vpop.f32.mrb[55].mxu1 }
 0x372   : > { %v4965_v10 = vld [vmem:[#allocation5 + $0x24] ss:$16 sps:$4 sm:$0xff]  }
 0x373   : > { %v2312_v11 = vmax.bf16 %v5290_v20, %v2280_v9  ;;  %v4962_v9 = vld [vmem:[#allocation5] ss:$16 sps:$4 sm:$0xff]  }
 0x375   : > { %3118 = vmatpush1.bf16.msra.mxu0 %v2312_v11 }
 0x376   : > { %v2068_v12 = vpop.f32.mrb[56].mxu1  ;;  %3119 = vmatprep.subr.bf16.mxu0 %v5290_v20 }
 0x377   : > { %v2070_v13 = vpop.f32.mrb[57].mxu1 }
 0x378   : > { %v2071_v14 = vpop.f32.mrb[58].mxu1 }
 0x379   : > { %v2281_v15 = vpack.c.bf16 %v2071_v14, %v2068_v12  ;;  %v2073_v16 = vpop.f32.mrb[59].mxu1 }
 0x37b   : > { %v2313_v17 = vmax.bf16 %v5290_v20, %v2281_v15 }
 0x37d   : > { %3120 = vmatpush1.bf16.msra.mxu0 %v2313_v17  ;;  %v4967_v17 = vld [vmem:[#allocation5 + $0x20] ss:$16 sps:$4 sm:$0xff]  }
 0x37e   : > { %v2076_v18 = vpop.f32.mrb[60].mxu1  ;;  %3121 = vmatprep.subr.bf16.mxu0 %v5290_v20 }
 0x37f   : > { %v2078_v19 = vpop.f32.mrb[61].mxu1 }
 0x380   : > { %v2079_v21 = vpop.f32.mrb[62].mxu1 }
 0x381   : > { %v2282_v22 = vpack.c.bf16 %v2079_v21, %v2076_v18  ;;  %v2081_v23 = vpop.f32.mrb[63].mxu1  ;;  %v4968_v18 = vld [vmem:[#allocation5 + $0x44] ss:$16 sps:$4 sm:$0xff]  }
 0x383   : > { %v2314_v24 = vmax.bf16 %v5290_v20, %v2282_v22 }
 0x385   : > { %3122 = vmatpush1.bf16.msra.mxu0 %v2314_v24 }
 0x386   : > { %v2084_v25 = vpop.f32.mrb[64].mxu1  ;;  %3123 = vmatprep.subr.bf16.mxu0 %v5290_v20 }
 0x387   : > { %v2086_v26 = vpop.f32.mrb[65].mxu1 }
 0x388   : > { %v2087_v27 = vpop.f32.mrb[66].mxu1  ;;  %v4970_v26 = vld [vmem:[#allocation5 + $0x40] ss:$16 sps:$4 sm:$0xff]  }
 0x389   : > { %v2283_v28 = vpack.c.bf16 %v2087_v27, %v2084_v25  ;;  %v2089_v29 = vpop.f32.mrb[67].mxu1  ;;  %v4971_v27 = vld [vmem:[#allocation5 + $0x64] ss:$16 sps:$4 sm:$0xff]  }
 0x38b   : > { %v2315_v30 = vmax.bf16 %v5290_v20, %v2283_v28 }
 0x38d   : > { %3124 = vmatpush1.bf16.msra.mxu0 %v2315_v30 }
 0x38e   : > { %v2092_v31 = vpop.f32.mrb[68].mxu1  ;;  %3125 = vmatprep.subr.bf16.mxu0 %v5290_v20 }
 0x38f   : > { %v2094_v32 = vpop.f32.mrb[69].mxu1 }
 0x390   : > { %v2095_v33 = vpop.f32.mrb[70].mxu1 }
 0x391   : > { %v2284_v34 = vpack.c.bf16 %v2095_v33, %v2092_v31  ;;  %v2097_v35 = vpop.f32.mrb[71].mxu1 }
 0x392   : > { %v4974_v35 = vld [vmem:[#allocation5 + $0x84] ss:$16 sps:$4 sm:$0xff]  }
 0x393   : > { %v2316_v36 = vmax.bf16 %v5290_v20, %v2284_v34  ;;  %v4973_v34 = vld [vmem:[#allocation5 + $0x60] ss:$16 sps:$4 sm:$0xff]  }
 0x395   : > { %3126 = vmatpush1.bf16.msra.mxu0 %v2316_v36 }
 0x396   : > { %v2100_v37 = vpop.f32.mrb[72].mxu1  ;;  %3127 = vmatprep.subr.bf16.mxu0 %v5290_v20 }
 0x397   : > { %v2102_v38 = vpop.f32.mrb[73].mxu1 }
 0x398   : > { %v2103_v39 = vpop.f32.mrb[74].mxu1 }
 0x399   : > { %v2285_v40 = vpack.c.bf16 %v2103_v39, %v2100_v37  ;;  %v2105_v41 = vpop.f32.mrb[75].mxu1 }
 0x39b   : > { %v2317_v42 = vmax.bf16 %v5290_v20, %v2285_v40 }
 0x39d   : > { %3128 = vmatpush1.bf16.msra.mxu0 %v2317_v42  ;;  %v4976_v42 = vld [vmem:[#allocation5 + $0x80] ss:$16 sps:$4 sm:$0xff]  }
 0x39e   : > { %v2108_v43 = vpop.f32.mrb[76].mxu1  ;;  %3129 = vmatprep.subr.bf16.mxu0 %v5290_v20 }
 0x39f   : > { %v2110_v44 = vpop.f32.mrb[77].mxu1 }
 0x3a0   : > { %v2111_v45 = vpop.f32.mrb[78].mxu1 }
 0x3a1   : > { %v2286_v46 = vpack.c.bf16 %v2111_v45, %v2108_v43  ;;  %v2113_v47 = vpop.f32.mrb[79].mxu1  ;;  %v4977_v43 = vld [vmem:[#allocation5 + $0xa4] ss:$16 sps:$4 sm:$0xff]  }
 0x3a3   : > { %v2318_v48 = vmax.bf16 %v5290_v20, %v2286_v46 }
 0x3a5   : > { %3130 = vmatpush1.bf16.msra.mxu0 %v2318_v48 }
 0x3a6   : > { %v2116_v49 = vpop.f32.mrb[80].mxu1  ;;  %3131 = vmatprep.subr.bf16.mxu0 %v5290_v20 }
 0x3a7   : > { %v2118_v50 = vpop.f32.mrb[81].mxu1 }
 0x3a8   : > { %v2119_v51 = vpop.f32.mrb[82].mxu1  ;;  %v4979_v50 = vld [vmem:[#allocation5 + $0xa0] ss:$16 sps:$4 sm:$0xff]  }
 0x3a9   : > { %v2287_v52 = vpack.c.bf16 %v2119_v51, %v2116_v49  ;;  %v2121_v53 = vpop.f32.mrb[83].mxu1  ;;  %v4980_v51 = vld [vmem:[#allocation5 + $0xc4] ss:$16 sps:$4 sm:$0xff]  }
 0x3ab   : > { %v2319_v54 = vmax.bf16 %v5290_v20, %v2287_v52 }
 0x3ad   : > { %3132 = vmatpush1.bf16.msra.mxu0 %v2319_v54 }
 0x3ae   : > { %v2124_v55 = vpop.f32.mrb[84].mxu1  ;;  %3133 = vmatprep.subr.bf16.mxu0 %v5290_v20 }
 0x3af   : > { %v2126_v56 = vpop.f32.mrb[85].mxu1 }
 0x3b0   : > { %v2127_v57 = vpop.f32.mrb[86].mxu1 }
 0x3b1   : > { %v2288_v58 = vpack.c.bf16 %v2127_v57, %v2124_v55  ;;  %v2129_v59 = vpop.f32.mrb[87].mxu1 }
 0x3b2   : > { %v4983_v59 = vld [vmem:[#allocation5 + $0xe4] ss:$16 sps:$4 sm:$0xff]  }
 0x3b3   : > { %v2320_v60 = vmax.bf16 %v5290_v20, %v2288_v58  ;;  %v4982_v58 = vld [vmem:[#allocation5 + $0xc0] ss:$16 sps:$4 sm:$0xff]  }
 0x3b5   : > { %3134 = vmatpush1.bf16.msra.mxu0 %v2320_v60 }
 0x3b6   : > { %v2132_v61 = vpop.f32.mrb[88].mxu1  ;;  %3135 = vmatprep.subr.bf16.mxu0 %v5290_v20 }
 0x3b7   : > { %v2134_v62 = vpop.f32.mrb[89].mxu1 }
 0x3b8   : > { %v2135_v63 = vpop.f32.mrb[90].mxu1 }
 0x3b9   : > { %v2289_v0 = vpack.c.bf16 %v2135_v63, %v2132_v61  ;;  %v2137_v1 = vpop.f32.mrb[91].mxu1 }
 0x3bb   : > { %v2321_v2 = vmax.bf16 %v5290_v20, %v2289_v0 }
 0x3bd   : > { %3136 = vmatpush1.bf16.msra.mxu0 %v2321_v2  ;;  %v4985_v2 = vld [vmem:[#allocation5 + $0xe0] ss:$16 sps:$4 sm:$0xff]  }
 0x3be   : > { %v2140_v3 = vpop.f32.mrb[92].mxu1  ;;  %3137 = vmatprep.subr.bf16.mxu0 %v5290_v20 }
 0x3bf   : > { %v2142_v4 = vpop.f32.mrb[93].mxu1 }
 0x3c0   : > { %v2143_v5 = vpop.f32.mrb[94].mxu1 }
 0x3c1   : > { %v2290_v6 = vpack.c.bf16 %v2143_v5, %v2140_v3  ;;  %v2145_v7 = vpop.f32.mrb[95].mxu1  ;;  %v4986_v3 = vld [vmem:[#allocation5 + $0x104] ss:$16 sps:$4 sm:$0xff]  }
 0x3c3   : > { %v2322_v8 = vmax.bf16 %v5290_v20, %v2290_v6 }
 0x3c5   : > { %3138 = vmatpush1.bf16.msra.mxu0 %v2322_v8 }
 0x3c6   : > { %v2148_v11 = vpop.f32.mrb[96].mxu1  ;;  %3396 = vmatprep.subr.bf16.mxu0 %v5290_v20 }
 0x3c7   : > { %v2150_v12 = vpop.f32.mrb[97].mxu1 }
 0x3c8   : > { %v2151_v13 = vpop.f32.mrb[98].mxu1  ;;  %3140 = vmatmul.mubr.bf16.vlgmr.msra.gmra.mrb[32].mxu0 %v4962_v9 }
 0x3c9   : > { %v2291_v14 = vpack.c.bf16 %v2151_v13, %v2148_v11  ;;  %v2153_v15 = vpop.f32.mrb[99].mxu1  ;;  %3147 = vmatprep.mubr.bf16.mxu0 %v4965_v10  ;;  %v4988_v10 = vld [vmem:[#allocation5 + $0x100] ss:$16 sps:$4 sm:$0xff]   ;;  %v4989_v11 = vld [vmem:[#allocation5 + $0x124] ss:$16 sps:$4 sm:$0xff]  }
 0x3cb   : > { %v2323_v16 = vmax.bf16 %v5290_v20, %v2291_v14 }
 0x3cd   : > { %3397 = vmatpush1.bf16.msra.mxu0 %v2323_v16 }
 0x3ce   : > { %v2156_v19 = vpop.f32.mrb[100].mxu1  ;;  %3398 = vmatprep.subr.bf16.mxu0 %v5290_v20 }
 0x3cf   : > { %v2158_v21 = vpop.f32.mrb[101].mxu1 }
 0x3d0   : > { %v2159_v22 = vpop.f32.mrb[102].mxu1  ;;  %3148 = vmatmul.mubr.bf16.gmra.mrb[36].mxu0 %v4967_v17 }
 0x3d1   : > { %v2292_v23 = vpack.c.bf16 %v2159_v22, %v2156_v19  ;;  %v2161_v24 = vpop.f32.mrb[103].mxu1  ;;  %3155 = vmatprep.mubr.bf16.mxu0 %v4968_v18  ;;  %v4991_v18 = vld [vmem:[#allocation5 + $0x120] ss:$16 sps:$4 sm:$0xff]   ;;  %v4992_v19 = vld [vmem:[#allocation5 + $0x144] ss:$16 sps:$4 sm:$0xff]  }
 0x3d3   : > { %v2324_v25 = vmax.bf16 %v5290_v20, %v2292_v23 }
 0x3d5   : > { %3399 = vmatpush1.bf16.msra.mxu0 %v2324_v25 }
 0x3d6   : > { %v2164_v28 = vpop.f32.mrb[104].mxu1  ;;  %3400 = vmatprep.subr.bf16.mxu0 %v5290_v20 }
 0x3d7   : > { %v2166_v29 = vpop.f32.mrb[105].mxu1 }
 0x3d8   : > { %v2167_v30 = vpop.f32.mrb[106].mxu1  ;;  %3156 = vmatmul.mubr.bf16.gmra.mrb[40].mxu0 %v4970_v26 }
 0x3d9   : > { %v2293_v31 = vpack.c.bf16 %v2167_v30, %v2164_v28  ;;  %v2169_v32 = vpop.f32.mrb[107].mxu1  ;;  %3163 = vmatprep.mubr.bf16.mxu0 %v4971_v27  ;;  %v4994_v27 = vld [vmem:[#allocation5 + $0x140] ss:$16 sps:$4 sm:$0xff]   ;;  %v4995_v28 = vld [vmem:[#allocation5 + $0x164] ss:$16 sps:$4 sm:$0xff]  }
 0x3db   : > { %v2325_v33 = vmax.bf16 %v5290_v20, %v2293_v31 }
 0x3dd   : > { %3401 = vmatpush1.bf16.msra.mxu0 %v2325_v33 }
 0x3de   : > { %v2172_v36 = vpop.f32.mrb[108].mxu1  ;;  %3402 = vmatprep.subr.bf16.mxu0 %v5290_v20 }
 0x3df   : > { %v2174_v37 = vpop.f32.mrb[109].mxu1 }
 0x3e0   : > { %v2175_v38 = vpop.f32.mrb[110].mxu1  ;;  %3164 = vmatmul.mubr.bf16.gmra.mrb[44].mxu0 %v4973_v34 }
 0x3e1   : > { %v2294_v39 = vpack.c.bf16 %v2175_v38, %v2172_v36  ;;  %v2177_v40 = vpop.f32.mrb[111].mxu1  ;;  %3171 = vmatprep.mubr.bf16.mxu0 %v4974_v35  ;;  %v4997_v35 = vld [vmem:[#allocation5 + $0x160] ss:$16 sps:$4 sm:$0xff]   ;;  %v4998_v36 = vld [vmem:[#allocation5 + $0x184] ss:$16 sps:$4 sm:$0xff]  }
 0x3e3   : > { %v2326_v41 = vmax.bf16 %v5290_v20, %v2294_v39 }
 0x3e5   : > { %3403 = vmatpush1.bf16.msra.mxu0 %v2326_v41 }
 0x3e6   : > { %v2180_v44 = vpop.f32.mrb[112].mxu1  ;;  %3404 = vmatprep.subr.bf16.mxu0 %v5290_v20 }
 0x3e7   : > { %v2182_v45 = vpop.f32.mrb[113].mxu1 }
 0x3e8   : > { %v2183_v46 = vpop.f32.mrb[114].mxu1  ;;  %3172 = vmatmul.mubr.bf16.gmra.mrb[48].mxu0 %v4976_v42 }
 0x3e9   : > { %v2295_v47 = vpack.c.bf16 %v2183_v46, %v2180_v44  ;;  %v2185_v48 = vpop.f32.mrb[115].mxu1  ;;  %3179 = vmatprep.mubr.bf16.mxu0 %v4977_v43  ;;  %v5000_v43 = vld [vmem:[#allocation5 + $0x180] ss:$16 sps:$4 sm:$0xff]   ;;  %v5001_v44 = vld [vmem:[#allocation5 + $0x1a4] ss:$16 sps:$4 sm:$0xff]  }
 0x3eb   : > { %v2327_v49 = vmax.bf16 %v5290_v20, %v2295_v47 }
 0x3ed   : > { %3405 = vmatpush1.bf16.msra.mxu0 %v2327_v49 }
 0x3ee   : > { %v2188_v52 = vpop.f32.mrb[116].mxu1  ;;  %3406 = vmatprep.subr.bf16.mxu0 %v5290_v20 }
 0x3ef   : > { %v2190_v53 = vpop.f32.mrb[117].mxu1 }
 0x3f0   : > { %v2191_v54 = vpop.f32.mrb[118].mxu1  ;;  %3180 = vmatmul.mubr.bf16.gmra.mrb[52].mxu0 %v4979_v50 }
 0x3f1   : > { %v2296_v55 = vpack.c.bf16 %v2191_v54, %v2188_v52  ;;  %v2193_v56 = vpop.f32.mrb[119].mxu1  ;;  %3187 = vmatprep.mubr.bf16.mxu0 %v4980_v51  ;;  %v5003_v51 = vld [vmem:[#allocation5 + $0x1a0] ss:$16 sps:$4 sm:$0xff]   ;;  %v5004_v52 = vld [vmem:[#allocation5 + $0x1c4] ss:$16 sps:$4 sm:$0xff]  }
 0x3f3   : > { %v2328_v57 = vmax.bf16 %v5290_v20, %v2296_v55 }
 0x3f5   : > { %3407 = vmatpush1.bf16.msra.mxu0 %v2328_v57 }
 0x3f6   : > { %v2196_v60 = vpop.f32.mrb[120].mxu1  ;;  %3408 = vmatprep.subr.bf16.mxu0 %v5290_v20 }
 0x3f7   : > { %v2198_v61 = vpop.f32.mrb[121].mxu1 }
 0x3f8   : > { %v2199_v62 = vpop.f32.mrb[122].mxu1  ;;  %3188 = vmatmul.mubr.bf16.gmra.mrb[56].mxu0 %v4982_v58 }
 0x3f9   : > { %v2297_v63 = vpack.c.bf16 %v2199_v62, %v2196_v60  ;;  %v2201_v0 = vpop.f32.mrb[123].mxu1  ;;  %3195 = vmatprep.mubr.bf16.mxu0 %v4983_v59  ;;  %v5006_v59 = vld [vmem:[#allocation5 + $0x1c0] ss:$16 sps:$4 sm:$0xff]   ;;  %v5007_v60 = vld [vmem:[#allocation5 + $0x1e4] ss:$16 sps:$4 sm:$0xff]  }
 0x3fb   : > { %v2329_v1 = vmax.bf16 %v5290_v20, %v2297_v63 }
 0x3fd   : > { %3409 = vmatpush1.bf16.msra.mxu0 %v2329_v1 }
 0x3fe   : > { %v2204_v4 = vpop.f32.mrb[124].mxu1  ;;  %3410 = vmatprep.subr.bf16.mxu0 %v5290_v20 }
 0x3ff   : > { %v2206_v5 = vpop.f32.mrb[125].mxu1 }
 0x400   : > { %v2207_v6 = vpop.f32.mrb[126].mxu1  ;;  %3196 = vmatmul.mubr.bf16.gmra.mrb[60].mxu0 %v4985_v2 }
 0x401   : > { %v2298_v7 = vpack.c.bf16 %v2207_v6, %v2204_v4  ;;  %v2209_v8 = vpop.f32.mrb[127].mxu1  ;;  %3203 = vmatprep.mubr.bf16.mxu0 %v4986_v3  ;;  %v5009_v3 = vld [vmem:[#allocation5 + $0x1e0] ss:$16 sps:$4 sm:$0xff]   ;;  %v5010_v4 = vld [vmem:[#allocation5 + $0x204] ss:$16 sps:$4 sm:$0xff]  }
 0x403   : > { %v2330_v9 = vmax.bf16 %v5290_v20, %v2298_v7 }
 0x405   : > { %3411 = vmatpush1.bf16.msra.mxu0 %v2330_v9 }
 0x406   : > { %v2212_v12 = vpop.f32.mrb[128].mxu1  ;;  %3412 = vmatprep.subr.bf16.mxu0 %v5290_v20 }
 0x407   : > { %v2214_v13 = vpop.f32.mrb[129].mxu1 }
 0x408   : > { %v2215_v14 = vpop.f32.mrb[130].mxu1  ;;  %3204 = vmatmul.mubr.bf16.gmra.mrb[64].mxu0 %v4988_v10  ;;  %v5015_v13 = vld [vmem:[#allocation5 + $0x220] ss:$16 sps:$4 sm:$0xff]  }
 0x409   : > { %v2299_v15 = vpack.c.bf16 %v2215_v14, %v2212_v12  ;;  %v2217_v16 = vpop.f32.mrb[131].mxu1  ;;  %3211 = vmatprep.mubr.bf16.mxu0 %v4989_v11  ;;  %v5012_v11 = vld [vmem:[#allocation5 + $0x200] ss:$16 sps:$4 sm:$0xff]   ;;  %v5013_v12 = vld [vmem:[#allocation5 + $0x224] ss:$16 sps:$4 sm:$0xff]  }
 0x40a   : > { %v5016_v14 = vld [vmem:[#allocation5 + $0x244] ss:$16 sps:$4 sm:$0xff]  }
 0x40b   : > { %v2331_v17 = vmax.bf16 %v5290_v20, %v2299_v15  ;;  %v5018_v15 = vld [vmem:[#allocation5 + $0x240] ss:$16 sps:$4 sm:$0xff]   ;;  %v5019_v16 = vld [vmem:[#allocation5 + $0x264] ss:$16 sps:$4 sm:$0xff]  }
 0x40d   : > { %3413 = vmatpush1.bf16.msra.mxu0 %v2331_v17  ;;  %v5021_v17 = vld [vmem:[#allocation5 + $0x260] ss:$16 sps:$4 sm:$0xff]  }
 0x40e   : > { %v2220_v21 = vpop.f32.mrb[132].mxu1  ;;  %3414 = vmatprep.subr.bf16.mxu0 %v5290_v20 }
 0x40f   : > { %v2222_v22 = vpop.f32.mrb[133].mxu1 }
 0x410   : > { %v2223_v23 = vpop.f32.mrb[134].mxu1  ;;  %3212 = vmatmul.mubr.bf16.gmra.mrb[68].mxu0 %v4991_v18  ;;  %v5022_v18 = vld [vmem:[#allocation5 + $0x284] ss:$16 sps:$4 sm:$0xff]   ;;  %v5027_v22 = vld [vmem:[#allocation5 + $0x2a0] ss:$16 sps:$4 sm:$0xff]  }
 0x411   : > { %v2300_v24 = vpack.c.bf16 %v2223_v23, %v2220_v21  ;;  %v2225_v25 = vpop.f32.mrb[135].mxu1  ;;  %3219 = vmatprep.mubr.bf16.mxu0 %v4992_v19  ;;  %v5024_v19 = vld [vmem:[#allocation5 + $0x280] ss:$16 sps:$4 sm:$0xff]   ;;  %v5025_v21 = vld [vmem:[#allocation5 + $0x2a4] ss:$16 sps:$4 sm:$0xff]  }
 0x412   : > { %v5028_v23 = vld [vmem:[#allocation5 + $0x2c4] ss:$16 sps:$4 sm:$0xff]  }
 0x413   : > { %v2332_v26 = vmax.bf16 %v5290_v20, %v2300_v24  ;;  %v5030_v24 = vld [vmem:[#allocation5 + $0x2c0] ss:$16 sps:$4 sm:$0xff]   ;;  %v5031_v25 = vld [vmem:[#allocation5 + $0x2e4] ss:$16 sps:$4 sm:$0xff]  }
 0x415   : > { %3415 = vmatpush1.bf16.msra.mxu0 %v2332_v26  ;;  %v5033_v26 = vld [vmem:[#allocation5 + $0x2e0] ss:$16 sps:$4 sm:$0xff]  }
 0x416   : > { %v2228_v29 = vpop.f32.mrb[136].mxu1  ;;  %3416 = vmatprep.subr.bf16.mxu0 %v5290_v20 }
 0x417   : > { %v2230_v30 = vpop.f32.mrb[137].mxu1 }
 0x418   : > { %v2231_v31 = vpop.f32.mrb[138].mxu1  ;;  %3220 = vmatmul.mubr.bf16.gmra.mrb[72].mxu0 %v4994_v27  ;;  %v5034_v27 = vld [vmem:[#allocation5 + $0x304] ss:$16 sps:$4 sm:$0xff]   ;;  %v5039_v30 = vld [vmem:[#allocation5 + $0x320] ss:$16 sps:$4 sm:$0xff]  }
 0x419   : > { %v2301_v32 = vpack.c.bf16 %v2231_v31, %v2228_v29  ;;  %v2233_v33 = vpop.f32.mrb[139].mxu1  ;;  %3227 = vmatprep.mubr.bf16.mxu0 %v4995_v28  ;;  %v5036_v28 = vld [vmem:[#allocation5 + $0x300] ss:$16 sps:$4 sm:$0xff]   ;;  %v5037_v29 = vld [vmem:[#allocation5 + $0x324] ss:$16 sps:$4 sm:$0xff]  }
 0x41a   : > { %v5040_v31 = vld [vmem:[#allocation5 + $0x344] ss:$16 sps:$4 sm:$0xff]  }
 0x41b   : > { %v2333_v34 = vmax.bf16 %v5290_v20, %v2301_v32  ;;  %v5042_v32 = vld [vmem:[#allocation5 + $0x340] ss:$16 sps:$4 sm:$0xff]   ;;  %v5043_v33 = vld [vmem:[#allocation5 + $0x364] ss:$16 sps:$4 sm:$0xff]  }
 0x41d   : > { %3417 = vmatpush1.bf16.msra.mxu0 %v2333_v34  ;;  %v5045_v34 = vld [vmem:[#allocation5 + $0x360] ss:$16 sps:$4 sm:$0xff]  }
 0x41e   : > { %v2236_v37 = vpop.f32.mrb[140].mxu1  ;;  %3418 = vmatprep.subr.bf16.mxu0 %v5290_v20 }
 0x41f   : > { %v2238_v38 = vpop.f32.mrb[141].mxu1 }
 0x420   : > { %v2239_v39 = vpop.f32.mrb[142].mxu1  ;;  %3228 = vmatmul.mubr.bf16.gmra.mrb[76].mxu0 %v4997_v35  ;;  %v5046_v35 = vld [vmem:[#allocation5 + $0x384] ss:$16 sps:$4 sm:$0xff]   ;;  %v5051_v38 = vld [vmem:[#allocation5 + $0x3a0] ss:$16 sps:$4 sm:$0xff]  }
 0x421   : > { %v2302_v40 = vpack.c.bf16 %v2239_v39, %v2236_v37  ;;  %v2241_v41 = vpop.f32.mrb[143].mxu1  ;;  %3235 = vmatprep.mubr.bf16.mxu0 %v4998_v36  ;;  %v5048_v36 = vld [vmem:[#allocation5 + $0x380] ss:$16 sps:$4 sm:$0xff]   ;;  %v5049_v37 = vld [vmem:[#allocation5 + $0x3a4] ss:$16 sps:$4 sm:$0xff]  }
 0x422   : > { %v5052_v39 = vld [vmem:[#allocation5 + $0x3c4] ss:$16 sps:$4 sm:$0xff]  }
 0x423   : > { %v2334_v42 = vmax.bf16 %v5290_v20, %v2302_v40  ;;  %v5054_v40 = vld [vmem:[#allocation5 + $0x3c0] ss:$16 sps:$4 sm:$0xff]   ;;  %v5055_v41 = vld [vmem:[#allocation5 + $0x3e4] ss:$16 sps:$4 sm:$0xff]  }
 0x425   : > { %3419 = vmatpush1.bf16.msra.mxu0 %v2334_v42  ;;  %v5057_v42 = vld [vmem:[#allocation5 + $0x3e0] ss:$16 sps:$4 sm:$0xff]  }
 0x426   : > { %v2244_v45 = vpop.f32.mrb[144].mxu1  ;;  %3420 = vmatprep.subr.bf16.mxu0 %v5290_v20 }
 0x427   : > { %v2246_v46 = vpop.f32.mrb[145].mxu1 }
 0x428   : > { %v2247_v47 = vpop.f32.mrb[146].mxu1  ;;  %3236 = vmatmul.mubr.bf16.gmra.mrb[80].mxu0 %v5000_v43  ;;  %v5060_v43 = vld [vmem:[#allocation5 + $0xc] ss:$16 sps:$4 sm:$0xff]   ;;  %v5063_v46 = vld [vmem:[#allocation5 + $0x28] ss:$16 sps:$4 sm:$0xff]  }
 0x429   : > { %v2303_v48 = vpack.c.bf16 %v2247_v47, %v2244_v45  ;;  %v2249_v49 = vpop.f32.mrb[147].mxu1  ;;  %3243 = vmatprep.mubr.bf16.mxu0 %v5001_v44  ;;  %v5058_v44 = vld [vmem:[#allocation5 + $0x8] ss:$16 sps:$4 sm:$0xff]   ;;  %v5061_v45 = vld [vmem:[#allocation5 + $0x2c] ss:$16 sps:$4 sm:$0xff]  }
 0x42a   : > { %v5064_v47 = vld [vmem:[#allocation5 + $0x4c] ss:$16 sps:$4 sm:$0xff]  }
 0x42b   : > { %v2335_v50 = vmax.bf16 %v5290_v20, %v2303_v48  ;;  %v5066_v48 = vld [vmem:[#allocation5 + $0x48] ss:$16 sps:$4 sm:$0xff]   ;;  %v5067_v49 = vld [vmem:[#allocation5 + $0x6c] ss:$16 sps:$4 sm:$0xff]  }
 0x42d   : > { %3421 = vmatpush1.bf16.msra.mxu0 %v2335_v50  ;;  %v5069_v50 = vld [vmem:[#allocation5 + $0x68] ss:$16 sps:$4 sm:$0xff]  }
 0x42e   : > { %v2252_v53 = vpop.f32.mrb[148].mxu1  ;;  %3422 = vmatprep.subr.bf16.mxu0 %v5290_v20 }
 0x42f   : > { %v2254_v54 = vpop.f32.mrb[149].mxu1 }
 0x430   : > { %v2255_v55 = vpop.f32.mrb[150].mxu1  ;;  %3244 = vmatmul.mubr.bf16.gmra.mrb[84].mxu0 %v5003_v51  ;;  %v5070_v51 = vld [vmem:[#allocation5 + $0x8c] ss:$16 sps:$4 sm:$0xff]   ;;  %v5075_v54 = vld [vmem:[#allocation5 + $0xa8] ss:$16 sps:$4 sm:$0xff]  }
 0x431   : > { %v2304_v56 = vpack.c.bf16 %v2255_v55, %v2252_v53  ;;  %v2257_v57 = vpop.f32.mrb[151].mxu1  ;;  %3251 = vmatprep.mubr.bf16.mxu0 %v5004_v52  ;;  %v5072_v52 = vld [vmem:[#allocation5 + $0x88] ss:$16 sps:$4 sm:$0xff]   ;;  %v5073_v53 = vld [vmem:[#allocation5 + $0xac] ss:$16 sps:$4 sm:$0xff]  }
 0x432   : > { %v5076_v55 = vld [vmem:[#allocation5 + $0xcc] ss:$16 sps:$4 sm:$0xff]  }
 0x433   : > { %v2336_v58 = vmax.bf16 %v5290_v20, %v2304_v56  ;;  %v5078_v56 = vld [vmem:[#allocation5 + $0xc8] ss:$16 sps:$4 sm:$0xff]   ;;  %v5079_v57 = vld [vmem:[#allocation5 + $0xec] ss:$16 sps:$4 sm:$0xff]  }
 0x435   : > { %3423 = vmatpush1.bf16.msra.mxu0 %v2336_v58  ;;  %v5081_v58 = vld [vmem:[#allocation5 + $0xe8] ss:$16 sps:$4 sm:$0xff]  }
 0x436   : > { %v2260_v61 = vpop.f32.mrb[152].mxu1  ;;  %3424 = vmatprep.subr.bf16.mxu0 %v5290_v20 }
 0x437   : > { %v2262_v62 = vpop.f32.mrb[153].mxu1 }
 0x438   : > { %v2263_v63 = vpop.f32.mrb[154].mxu1  ;;  %3252 = vmatmul.mubr.bf16.gmra.mrb[88].mxu0 %v5006_v59  ;;  %v5082_v59 = vld [vmem:[#allocation5 + $0x10c] ss:$16 sps:$4 sm:$0xff]   ;;  %v5087_v62 = vld [vmem:[#allocation5 + $0x128] ss:$16 sps:$4 sm:$0xff]  }
 0x439   : > { %v2305_v0 = vpack.c.bf16 %v2263_v63, %v2260_v61  ;;  %v2265_v1 = vpop.f32.mrb[155].mxu1  ;;  %3259 = vmatprep.mubr.bf16.mxu0 %v5007_v60  ;;  %v5084_v60 = vld [vmem:[#allocation5 + $0x108] ss:$16 sps:$4 sm:$0xff]   ;;  %v5085_v61 = vld [vmem:[#allocation5 + $0x12c] ss:$16 sps:$4 sm:$0xff]  }
 0x43a   : > { %v5088_v63 = vld [vmem:[#allocation5 + $0x14c] ss:$16 sps:$4 sm:$0xff]  }
 0x43b   : > { %v2337_v2 = vmax.bf16 %v5290_v20, %v2305_v0  ;;  %v5090_v0 = vld [vmem:[#allocation5 + $0x148] ss:$16 sps:$4 sm:$0xff]   ;;  %v5091_v1 = vld [vmem:[#allocation5 + $0x16c] ss:$16 sps:$4 sm:$0xff]  }
 0x43d   : > { %3425 = vmatpush1.bf16.msra.mxu0 %v2337_v2  ;;  %v5093_v2 = vld [vmem:[#allocation5 + $0x168] ss:$16 sps:$4 sm:$0xff]  }
 0x43e   : > { %v2268_v5 = vpop.f32.mrb[156].mxu1  ;;  %3426 = vmatprep.subr.bf16.mxu0 %v5290_v20 }
 0x43f   : > { %v2270_v6 = vpop.f32.mrb[157].mxu1 }
 0x440   : > { %v2271_v7 = vpop.f32.mrb[158].mxu1  ;;  %3260 = vmatmul.mubr.bf16.gmra.mrb[92].mxu0 %v5009_v3  ;;  %v5094_v3 = vld [vmem:[#allocation5 + $0x18c] ss:$16 sps:$4 sm:$0xff]   ;;  %v5099_v6 = vld [vmem:[#allocation5 + $0x1a8] ss:$16 sps:$4 sm:$0xff]  }
 0x441   : > { %v2306_v8 = vpack.c.bf16 %v2271_v7, %v2268_v5  ;;  %v2273_v9 = vpop.f32.mrb[159].mxu1  ;;  %3267 = vmatprep.mubr.bf16.mxu0 %v5010_v4  ;;  %v5096_v4 = vld [vmem:[#allocation5 + $0x188] ss:$16 sps:$4 sm:$0xff]   ;;  %v5097_v5 = vld [vmem:[#allocation5 + $0x1ac] ss:$16 sps:$4 sm:$0xff]  }
 0x442   : > { %v5100_v7 = vld [vmem:[#allocation5 + $0x1cc] ss:$16 sps:$4 sm:$0xff]  }
 0x443   : > { %v2338_v10 = vmax.bf16 %v5290_v20, %v2306_v8  ;;  %v5102_v8 = vld [vmem:[#allocation5 + $0x1c8] ss:$16 sps:$4 sm:$0xff]   ;;  %v5103_v9 = vld [vmem:[#allocation5 + $0x1ec] ss:$16 sps:$4 sm:$0xff]  }
 0x445   : > { %3427 = vmatpush1.bf16.msra.mxu0 %v2338_v10  ;;  %v5105_v10 = vld [vmem:[#allocation5 + $0x1e8] ss:$16 sps:$4 sm:$0xff]  }
 0x448   : > { %3268 = vmatmul.mubr.bf16.gmra.mrb[96].mxu0 %v5012_v11  ;;  %v5106_v11 = vld [vmem:[#allocation5 + $0x20c] ss:$16 sps:$4 sm:$0xff]  }
 0x449   : > { %3275 = vmatprep.mubr.bf16.mxu0 %v5013_v12  ;;  %v5108_v12 = vld [vmem:[#allocation5 + $0x208] ss:$16 sps:$4 sm:$0xff]  }
 0x450   : > { %3276 = vmatmul.mubr.bf16.gmra.mrb[100].mxu0 %v5015_v13  ;;  %v5109_v13 = vld [vmem:[#allocation5 + $0x22c] ss:$16 sps:$4 sm:$0xff]  }
 0x451   : > { %3283 = vmatprep.mubr.bf16.mxu0 %v5016_v14  ;;  %v5111_v14 = vld [vmem:[#allocation5 + $0x228] ss:$16 sps:$4 sm:$0xff]  }
 0x458   : > { %3284 = vmatmul.mubr.bf16.gmra.mrb[104].mxu0 %v5018_v15  ;;  %v5112_v15 = vld [vmem:[#allocation5 + $0x24c] ss:$16 sps:$4 sm:$0xff]  }
 0x459   : > { %3291 = vmatprep.mubr.bf16.mxu0 %v5019_v16  ;;  %v5114_v16 = vld [vmem:[#allocation5 + $0x248] ss:$16 sps:$4 sm:$0xff]  }
 0x460   : > { %3292 = vmatmul.mubr.bf16.gmra.mrb[108].mxu0 %v5021_v17  ;;  %v5115_v17 = vld [vmem:[#allocation5 + $0x26c] ss:$16 sps:$4 sm:$0xff]  }
 0x461   : > { %3299 = vmatprep.mubr.bf16.mxu0 %v5022_v18  ;;  %v5117_v18 = vld [vmem:[#allocation5 + $0x268] ss:$16 sps:$4 sm:$0xff]  }
 0x468   : > { %3300 = vmatmul.mubr.bf16.gmra.mrb[112].mxu0 %v5024_v19  ;;  %v5118_v19 = vld [vmem:[#allocation5 + $0x28c] ss:$16 sps:$4 sm:$0xff]  }
 0x469   : > { %3307 = vmatprep.mubr.bf16.mxu0 %v5025_v21  ;;  %v5120_v21 = vld [vmem:[#allocation5 + $0x288] ss:$16 sps:$4 sm:$0xff]  }
 0x470   : > { %3308 = vmatmul.mubr.bf16.gmra.mrb[116].mxu0 %v5027_v22  ;;  %v5121_v22 = vld [vmem:[#allocation5 + $0x2ac] ss:$16 sps:$4 sm:$0xff]  }
 0x471   : > { %3315 = vmatprep.mubr.bf16.mxu0 %v5028_v23  ;;  %v5123_v23 = vld [vmem:[#allocation5 + $0x2a8] ss:$16 sps:$4 sm:$0xff]  }
 0x478   : > { %3316 = vmatmul.mubr.bf16.gmra.mrb[120].mxu0 %v5030_v24  ;;  %v5124_v24 = vld [vmem:[#allocation5 + $0x2cc] ss:$16 sps:$4 sm:$0xff]  }
 0x479   : > { %3323 = vmatprep.mubr.bf16.mxu0 %v5031_v25  ;;  %v5126_v25 = vld [vmem:[#allocation5 + $0x2c8] ss:$16 sps:$4 sm:$0xff]  }
 0x480   : > { %3324 = vmatmul.mubr.bf16.gmra.mrb[124].mxu0 %v5033_v26  ;;  %v5127_v26 = vld [vmem:[#allocation5 + $0x2ec] ss:$16 sps:$4 sm:$0xff]  }
 0x481   : > { %3331 = vmatprep.mubr.bf16.mxu0 %v5034_v27  ;;  %v5129_v27 = vld [vmem:[#allocation5 + $0x2e8] ss:$16 sps:$4 sm:$0xff]  }
 0x488   : > { %3332 = vmatmul.mubr.bf16.gmra.mrb[128].mxu0 %v5036_v28  ;;  %v5130_v28 = vld [vmem:[#allocation5 + $0x30c] ss:$16 sps:$4 sm:$0xff]  }
 0x489   : > { %3339 = vmatprep.mubr.bf16.mxu0 %v5037_v29  ;;  %v5132_v29 = vld [vmem:[#allocation5 + $0x308] ss:$16 sps:$4 sm:$0xff]  }
 0x490   : > { %3340 = vmatmul.mubr.bf16.gmra.mrb[132].mxu0 %v5039_v30  ;;  %v5133_v30 = vld [vmem:[#allocation5 + $0x32c] ss:$16 sps:$4 sm:$0xff]  }
 0x491   : > { %3347 = vmatprep.mubr.bf16.mxu0 %v5040_v31  ;;  %v5135_v31 = vld [vmem:[#allocation5 + $0x328] ss:$16 sps:$4 sm:$0xff]  }
 0x498   : > { %3348 = vmatmul.mubr.bf16.gmra.mrb[136].mxu0 %v5042_v32  ;;  %v5136_v32 = vld [vmem:[#allocation5 + $0x34c] ss:$16 sps:$4 sm:$0xff]  }
 0x499   : > { %3355 = vmatprep.mubr.bf16.mxu0 %v5043_v33  ;;  %v5138_v33 = vld [vmem:[#allocation5 + $0x348] ss:$16 sps:$4 sm:$0xff]  }
 0x4a0   : > { %3356 = vmatmul.mubr.bf16.gmra.mrb[140].mxu0 %v5045_v34  ;;  %v5139_v34 = vld [vmem:[#allocation5 + $0x36c] ss:$16 sps:$4 sm:$0xff]  }
 0x4a1   : > { %3363 = vmatprep.mubr.bf16.mxu0 %v5046_v35 }
 0x4a8   : > { %3364 = vmatmul.mubr.bf16.gmra.mrb[144].mxu0 %v5048_v36 }
 0x4a9   : > { %3371 = vmatprep.mubr.bf16.mxu0 %v5049_v37  ;;  %v5141_v37 = vld [vmem:[#allocation5 + $0x368] ss:$16 sps:$4 sm:$0xff]  }
 0x4b0   : > { %3372 = vmatmul.mubr.bf16.gmra.mrb[148].mxu0 %v5051_v38 }
 0x4b1   : > { %3379 = vmatprep.mubr.bf16.mxu0 %v5052_v39  ;;  %v5142_v39 = vld [vmem:[#allocation5 + $0x38c] ss:$16 sps:$4 sm:$0xff]  }
 0x4b8   : > { %3380 = vmatmul.mubr.bf16.gmra.mrb[152].mxu0 %v5054_v40 }
 0x4b9   : > { %3387 = vmatprep.mubr.bf16.mxu0 %v5055_v41 }
 0x4c0   : > { %3388 = vmatmul.mubr.bf16.gmra.mrb[156].mxu0 %v5057_v42 }
 0x4c1   : > { %3428 = vmatprep.mubr.bf16.mxu0 %v5060_v43 }
 0x4c8   : > { %3429 = vmatmul.mubr.bf16.vlgmr.msra.gmra.mrb[32].mxu0 %v5058_v44  ;;  %v5144_v44 = vld [vmem:[#allocation5 + $0x388] ss:$16 sps:$4 sm:$0xff]  }
 0x4c9   : > { %3436 = vmatprep.mubr.bf16.mxu0 %v5061_v45 }
 0x4d0   : > { %3437 = vmatmul.mubr.bf16.gmra.mrb[36].mxu0 %v5063_v46  ;;  %v5145_v46 = vld [vmem:[#allocation5 + $0x3ac] ss:$16 sps:$4 sm:$0xff]  }
 0x4d1   : > { %3444 = vmatprep.mubr.bf16.mxu0 %v5064_v47 }
 0x4d8   : > { %3445 = vmatmul.mubr.bf16.gmra.mrb[40].mxu0 %v5066_v48 }
 0x4d9   : > { %3452 = vmatprep.mubr.bf16.mxu0 %v5067_v49 }
 0x4e0   : > { %3453 = vmatmul.mubr.bf16.gmra.mrb[44].mxu0 %v5069_v50 }
 0x4e1   : > { %3460 = vmatprep.mubr.bf16.mxu0 %v5070_v51  ;;  %v5147_v51 = vld [vmem:[#allocation5 + $0x3a8] ss:$16 sps:$4 sm:$0xff]  }
 0x4e8   : > { %3461 = vmatmul.mubr.bf16.gmra.mrb[48].mxu0 %v5072_v52 }
 0x4e9   : > { %3468 = vmatprep.mubr.bf16.mxu0 %v5073_v53  ;;  %v5148_v53 = vld [vmem:[#allocation5 + $0x3cc] ss:$16 sps:$4 sm:$0xff]  }
 0x4f0   : > { %3469 = vmatmul.mubr.bf16.gmra.mrb[52].mxu0 %v5075_v54 }
 0x4f1   : > { %3476 = vmatprep.mubr.bf16.mxu0 %v5076_v55 }
 0x4f8   : > { %3477 = vmatmul.mubr.bf16.gmra.mrb[56].mxu0 %v5078_v56 }
 0x4f9   : > { %3484 = vmatprep.mubr.bf16.mxu0 %v5079_v57 }
 0x500   : > { %3485 = vmatmul.mubr.bf16.gmra.mrb[60].mxu0 %v5081_v58  ;;  %v5150_v58 = vld [vmem:[#allocation5 + $0x3c8] ss:$16 sps:$4 sm:$0xff]  }
 0x501   : > { %3492 = vmatprep.mubr.bf16.mxu0 %v5082_v59 }
 0x508   : > { %3493 = vmatmul.mubr.bf16.gmra.mrb[64].mxu0 %v5084_v60  ;;  %v5151_v60 = vld [vmem:[#allocation5 + $0x3ec] ss:$16 sps:$4 sm:$0xff]  }
 0x509   : > { %3500 = vmatprep.mubr.bf16.mxu0 %v5085_v61 }
 0x510   : > { %3501 = vmatmul.mubr.bf16.gmra.mrb[68].mxu0 %v5087_v62 }
 0x511   : > { %3508 = vmatprep.mubr.bf16.mxu0 %v5088_v63 }
 0x518   : > { %3509 = vmatmul.mubr.bf16.gmra.mrb[72].mxu0 %v5090_v0 }
 0x519   : > { %3516 = vmatprep.mubr.bf16.mxu0 %v5091_v1  ;;  %v5153_v1 = vld [vmem:[#allocation5 + $0x3e8] ss:$16 sps:$4 sm:$0xff]  }
 0x520   : > { %3517 = vmatmul.mubr.bf16.gmra.mrb[76].mxu0 %v5093_v2 }
 0x521   : > { %3524 = vmatprep.mubr.bf16.mxu0 %v5094_v3 }
 0x528   : > { %3525 = vmatmul.mubr.bf16.gmra.mrb[80].mxu0 %v5096_v4 }
 0x529   : > { %3532 = vmatprep.mubr.bf16.mxu0 %v5097_v5 }
 0x530   : > { %3533 = vmatmul.mubr.bf16.gmra.mrb[84].mxu0 %v5099_v6 }
 0x531   : > { %3540 = vmatprep.mubr.bf16.mxu0 %v5100_v7 }
 0x538   : > { %3541 = vmatmul.mubr.bf16.gmra.mrb[88].mxu0 %v5102_v8 }
 0x539   : > { %3548 = vmatprep.mubr.bf16.mxu0 %v5103_v9 }
 0x540   : > { %3549 = vmatmul.mubr.bf16.gmra.mrb[92].mxu0 %v5105_v10 }
 0x541   : > { %3556 = vmatprep.mubr.bf16.mxu0 %v5106_v11 }
 0x548   : > { %3557 = vmatmul.mubr.bf16.gmra.mrb[96].mxu0 %v5108_v12 }
 0x549   : > { %3564 = vmatprep.mubr.bf16.mxu0 %v5109_v13 }
 0x550   : > { %3565 = vmatmul.mubr.bf16.gmra.mrb[100].mxu0 %v5111_v14 }
 0x551   : > { %3572 = vmatprep.mubr.bf16.mxu0 %v5112_v15 }
 0x558   : > { %3573 = vmatmul.mubr.bf16.gmra.mrb[104].mxu0 %v5114_v16 }
 0x559   : > { %3580 = vmatprep.mubr.bf16.mxu0 %v5115_v17 }
 0x560   : > { %3581 = vmatmul.mubr.bf16.gmra.mrb[108].mxu0 %v5117_v18 }
 0x561   : > { %3588 = vmatprep.mubr.bf16.mxu0 %v5118_v19 }
 0x568   : > { %3589 = vmatmul.mubr.bf16.gmra.mrb[112].mxu0 %v5120_v21 }
 0x569   : > { %3596 = vmatprep.mubr.bf16.mxu0 %v5121_v22 }
 0x570   : > { %3597 = vmatmul.mubr.bf16.gmra.mrb[116].mxu0 %v5123_v23 }
 0x571   : > { %3604 = vmatprep.mubr.bf16.mxu0 %v5124_v24 }
 0x578   : > { %3605 = vmatmul.mubr.bf16.gmra.mrb[120].mxu0 %v5126_v25 }
 0x579   : > { %3612 = vmatprep.mubr.bf16.mxu0 %v5127_v26 }
 0x580   : > { %3613 = vmatmul.mubr.bf16.gmra.mrb[124].mxu0 %v5129_v27 }
 0x581   : > { %3620 = vmatprep.mubr.bf16.mxu0 %v5130_v28 }
 0x588   : > { %3621 = vmatmul.mubr.bf16.gmra.mrb[128].mxu0 %v5132_v29 }
 0x589   : > { %3628 = vmatprep.mubr.bf16.mxu0 %v5133_v30 }
 0x590   : > { %3629 = vmatmul.mubr.bf16.gmra.mrb[132].mxu0 %v5135_v31 }
 0x591   : > { %3636 = vmatprep.mubr.bf16.mxu0 %v5136_v32 }
 0x598   : > { %3637 = vmatmul.mubr.bf16.gmra.mrb[136].mxu0 %v5138_v33 }
 0x599   : > { %3644 = vmatprep.mubr.bf16.mxu0 %v5139_v34 }
 0x59b   : > { %v5703_v35 = vpop.f32.mrb[32].mxu0 }
 0x59c   : > { %v3432_v36 = vpop.f32.mrb[33].mxu0 }
 0x59d   : > { %v3433_v38 = vpop.f32.mrb[34].mxu0 }
 0x59e   : > { %v3685_v40 = vpack.c.bf16 %v3433_v38, %v5703_v35  ;;  %v3435_v41 = vpop.f32.mrb[35].mxu0 }
 0x5a0   : > { %3645 = vmatmul.mubr.bf16.gmra.mrb[140].mxu0 %v5141_v37  ;;  %v3717_v27 = vmax.bf16 %v5290_v20, %v3685_v40 }
 0x5a1   : > { %3652 = vmatprep.mubr.bf16.mxu0 %v5142_v39 }
 0x5a3   : > { %v5706_v42 = vpop.f32.mrb[36].mxu0 }
 0x5a4   : > { %v3440_v43 = vpop.f32.mrb[37].mxu0 }
 0x5a5   : > { %v3441_v45 = vpop.f32.mrb[38].mxu0 }
 0x5a6   : > { %v3686_v47 = vpack.c.bf16 %v3441_v45, %v5706_v42  ;;  %v3443_v48 = vpop.f32.mrb[39].mxu0 }
 0x5a8   : > { %3653 = vmatmul.mubr.bf16.gmra.mrb[144].mxu0 %v5144_v44  ;;  %v3718_v34 = vmax.bf16 %v5290_v20, %v3686_v47 }
 0x5a9   : > { %3660 = vmatprep.mubr.bf16.mxu0 %v5145_v46 }
 0x5ab   : > { %v5709_v49 = vpop.f32.mrb[40].mxu0 }
 0x5ac   : > { %v3448_v50 = vpop.f32.mrb[41].mxu0 }
 0x5ad   : > { %v3449_v52 = vpop.f32.mrb[42].mxu0 }
 0x5ae   : > { %v3687_v54 = vpack.c.bf16 %v3449_v52, %v5709_v49  ;;  %v3451_v55 = vpop.f32.mrb[43].mxu0 }
 0x5b0   : > { %3661 = vmatmul.mubr.bf16.gmra.mrb[148].mxu0 %v5147_v51  ;;  %v3719_v41 = vmax.bf16 %v5290_v20, %v3687_v54 }
 0x5b1   : > { %3668 = vmatprep.mubr.bf16.mxu0 %v5148_v53 }
 0x5b3   : > { %v5712_v56 = vpop.f32.mrb[44].mxu0 }
 0x5b4   : > { %v3456_v57 = vpop.f32.mrb[45].mxu0 }
 0x5b5   : > { %v3457_v59 = vpop.f32.mrb[46].mxu0 }
 0x5b6   : > { %v3688_v61 = vpack.c.bf16 %v3457_v59, %v5712_v56  ;;  %v3459_v62 = vpop.f32.mrb[47].mxu0 }
 0x5b8   : > { %3669 = vmatmul.mubr.bf16.gmra.mrb[152].mxu0 %v5150_v58  ;;  %v3720_v48 = vmax.bf16 %v5290_v20, %v3688_v61 }
 0x5b9   : > { %3676 = vmatprep.mubr.bf16.mxu0 %v5151_v60 }
 0x5bb   : > { %v5715_v63 = vpop.f32.mrb[48].mxu0 }
 0x5bc   : > { %v3464_v0 = vpop.f32.mrb[49].mxu0 }
 0x5bd   : > { %v3465_v2 = vpop.f32.mrb[50].mxu0 }
 0x5be   : > { %v3689_v3 = vpack.c.bf16 %v3465_v2, %v5715_v63  ;;  %v3467_v4 = vpop.f32.mrb[51].mxu0 }
 0x5c0   : > { %3677 = vmatmul.mubr.bf16.gmra.mrb[156].mxu0 %v5153_v1  ;;  %v3721_v55 = vmax.bf16 %v5290_v20, %v3689_v3 }
 0x5c3   : > { %v5718_v5 = vpop.f32.mrb[52].mxu0 }
 0x5c4   : > { %v3472_v6 = vpop.f32.mrb[53].mxu0 }
 0x5c5   : > { %v5720_v7 = vpop.f32.mrb[54].mxu0 }
 0x5c6   : > { %v3690_v8 = vpack.c.bf16 %v5720_v7, %v5718_v5  ;;  %v3475_v9 = vpop.f32.mrb[55].mxu0 }
 0x5c8   : > { %v3722_v62 = vmax.bf16 %v5290_v20, %v3690_v8 }
 0x5cb   : > { %v5724_v10 = vpop.f32.mrb[56].mxu0 }
 0x5cc   : > { %v3480_v11 = vpop.f32.mrb[57].mxu0 }
 0x5cd   : > { %v5726_v12 = vpop.f32.mrb[58].mxu0 }
 0x5ce   : > { %v3691_v13 = vpack.c.bf16 %v5726_v12, %v5724_v10  ;;  %v3483_v14 = vpop.f32.mrb[59].mxu0 }
 0x5cf   : > { %v3749_v14 = vld [vmem:[%s5870_s4] sm:$0xff] }
 0x5d0   : > { %v3723_v6 = vmax.bf16 %v5290_v20, %v3691_v13  ;;  %v4265_v12 = vcombine.low %v3749_v14, %v3749_v14  ;;  %v5767_v13 = vld [vmem:[%s5870_s4 + $0x8] sm:$0xff] }
 0x5d3   : > { %v5730_v15 = vpop.f32.mrb[60].mxu0 }
 0x5d4   : > { %v3488_v16 = vpop.f32.mrb[61].mxu0 }
 0x5d5   : > { %v5732_v17 = vpop.f32.mrb[62].mxu0 }
 0x5d6   : > { %v3692_v18 = vpack.c.bf16 %v5732_v17, %v5730_v15  ;;  %v3491_v19 = vpop.f32.mrb[63].mxu0 }
 0x5d7   : > { %v4266_v19 = vcombine.high %v3749_v14, %v3749_v14 }
 0x5d8   : > { %v3724_v10 = vmax.bf16 %v5290_v20, %v3692_v18 }
 0x5d9   : > { %3797 = vmatprep.mubr.bf16.mxu0 %v4266_v19 }
 0x5db   : > { %v3494_v21 = vpop.f32.mrb[64].mxu0 }
 0x5dc   : > { %v3496_v22 = vpop.f32.mrb[65].mxu0 }
 0x5dd   : > { %v3497_v23 = vpop.f32.mrb[66].mxu0  ;;  %v4268_v22 = vcombine.high %v5767_v13, %v5767_v13 }
 0x5de   : > { %v3693_v24 = vpack.c.bf16 %v3497_v23, %v3494_v21  ;;  %v3499_v25 = vpop.f32.mrb[67].mxu0 }
 0x5df   : > { %3837 = vmatprep.mubr.bf16.mxu1 %v4268_v22 }
 0x5e0   : > { %v3725_v26 = vmax.bf16 %v5290_v20, %v3693_v24 }
 0x5e2   : > { %4305 = vmatprep.subr.bf16.mxu0 %v3725_v26 }
 0x5e3   : > { %v3502_v28 = vpop.f32.mrb[68].mxu0  ;;  %4306 = vmatpush3.bf16.msra.mxu0 %v3717_v27 }
 0x5e4   : > { %v3504_v29 = vpop.f32.mrb[69].mxu0 }
 0x5e5   : > { %v3505_v30 = vpop.f32.mrb[70].mxu0 }
 0x5e6   : > { %v3694_v31 = vpack.c.bf16 %v3505_v30, %v3502_v28  ;;  %v3507_v32 = vpop.f32.mrb[71].mxu0 }
 0x5e8   : > { %v3726_v33 = vmax.bf16 %v5290_v20, %v3694_v31 }
 0x5ea   : > { %4307 = vmatprep.subr.bf16.mxu0 %v3726_v33 }
 0x5eb   : > { %v3510_v35 = vpop.f32.mrb[72].mxu0  ;;  %4308 = vmatpush3.bf16.msra.mxu0 %v3718_v34 }
 0x5ec   : > { %v3512_v36 = vpop.f32.mrb[73].mxu0 }
 0x5ed   : > { %v3513_v37 = vpop.f32.mrb[74].mxu0 }
 0x5ee   : > { %v3695_v38 = vpack.c.bf16 %v3513_v37, %v3510_v35  ;;  %v3515_v39 = vpop.f32.mrb[75].mxu0 }
 0x5f0   : > { %v3727_v40 = vmax.bf16 %v5290_v20, %v3695_v38 }
 0x5f2   : > { %4309 = vmatprep.subr.bf16.mxu0 %v3727_v40 }
 0x5f3   : > { %v3518_v42 = vpop.f32.mrb[76].mxu0  ;;  %4310 = vmatpush3.bf16.msra.mxu0 %v3719_v41 }
 0x5f4   : > { %v3520_v43 = vpop.f32.mrb[77].mxu0 }
 0x5f5   : > { %v3521_v44 = vpop.f32.mrb[78].mxu0 }
 0x5f6   : > { %v3696_v45 = vpack.c.bf16 %v3521_v44, %v3518_v42  ;;  %v3523_v46 = vpop.f32.mrb[79].mxu0 }
 0x5f8   : > { %v3728_v47 = vmax.bf16 %v5290_v20, %v3696_v45 }
 0x5fa   : > { %4311 = vmatprep.subr.bf16.mxu0 %v3728_v47 }
 0x5fb   : > { %v3526_v49 = vpop.f32.mrb[80].mxu0  ;;  %4312 = vmatpush3.bf16.msra.mxu0 %v3720_v48 }
 0x5fc   : > { %v3528_v50 = vpop.f32.mrb[81].mxu0 }
 0x5fd   : > { %v3529_v51 = vpop.f32.mrb[82].mxu0 }
 0x5fe   : > { %v3697_v52 = vpack.c.bf16 %v3529_v51, %v3526_v49  ;;  %v3531_v53 = vpop.f32.mrb[83].mxu0 }
 0x600   : > { %v3729_v54 = vmax.bf16 %v5290_v20, %v3697_v52 }
 0x602   : > { %4313 = vmatprep.subr.bf16.mxu0 %v3729_v54 }
 0x603   : > { %v3534_v56 = vpop.f32.mrb[84].mxu0  ;;  %4314 = vmatpush3.bf16.msra.mxu0 %v3721_v55 }
 0x604   : > { %v3536_v57 = vpop.f32.mrb[85].mxu0 }
 0x605   : > { %v3537_v58 = vpop.f32.mrb[86].mxu0 }
 0x606   : > { %v3698_v59 = vpack.c.bf16 %v3537_v58, %v3534_v56  ;;  %v3539_v60 = vpop.f32.mrb[87].mxu0 }
 0x608   : > { %v3730_v61 = vmax.bf16 %v5290_v20, %v3698_v59 }
 0x60a   : > { %4315 = vmatprep.subr.bf16.mxu0 %v3730_v61 }
 0x60b   : > { %v3542_v63 = vpop.f32.mrb[88].mxu0  ;;  %4316 = vmatpush3.bf16.msra.mxu0 %v3722_v62 }
 0x60c   : > { %v3544_v0 = vpop.f32.mrb[89].mxu0 }
 0x60d   : > { %v3545_v1 = vpop.f32.mrb[90].mxu0 }
 0x60e   : > { %v3699_v2 = vpack.c.bf16 %v3545_v1, %v3542_v63  ;;  %v3547_v3 = vpop.f32.mrb[91].mxu0 }
 0x610   : > { %v3731_v4 = vmax.bf16 %v5290_v20, %v3699_v2 }
 0x612   : > { %4317 = vmatprep.subr.bf16.mxu0 %v3731_v4 }
 0x613   : > { %v3550_v9 = vpop.f32.mrb[92].mxu0  ;;  %4318 = vmatpush3.bf16.msra.mxu0 %v3723_v6 }
 0x614   : > { %v3552_v5 = vpop.f32.mrb[93].mxu0 }
 0x615   : > { %v3553_v7 = vpop.f32.mrb[94].mxu0 }
 0x616   : > { %v3700_v8 = vpack.c.bf16 %v3553_v7, %v3550_v9  ;;  %v3555_v11 = vpop.f32.mrb[95].mxu0 }
 0x618   : > { %v3732_v16 = vmax.bf16 %v5290_v20, %v3700_v8 }
 0x61a   : > { %4319 = vmatprep.subr.bf16.mxu0 %v3732_v16 }
 0x61b   : > { %v3558_v21 = vpop.f32.mrb[96].mxu0  ;;  %4320 = vmatpush3.bf16.msra.mxu0 %v3724_v10 }
 0x61c   : > { %v3560_v23 = vpop.f32.mrb[97].mxu0 }
 0x61d   : > { %v3561_v24 = vpop.f32.mrb[98].mxu0 }
 0x61e   : > { %v3701_v25 = vpack.c.bf16 %v3561_v24, %v3558_v21  ;;  %v3563_v15 = vpop.f32.mrb[99].mxu0  ;;  %3798 = vmatmul.mubr.bf16.vlgmr.msra.gmra.mrb[160].mxu0 %v4265_v12 }
 0x620   : > { %v3733_v1 = vmax.bf16 %v5290_v20, %v3701_v25 }
 0x623   : > { %v3566_v17 = vpop.f32.mrb[100].mxu0 }
 0x624   : > { %v3568_v18 = vpop.f32.mrb[101].mxu0 }
 0x625   : > { %v3569_v26 = vpop.f32.mrb[102].mxu0 }
 0x626   : > { %v3702_v27 = vpack.c.bf16 %v3569_v26, %v3566_v17  ;;  %v3571_v28 = vpop.f32.mrb[103].mxu0 }
 0x628   : > { %v3734_v7 = vmax.bf16 %v5290_v20, %v3702_v27 }
 0x62b   : > { %v3574_v29 = vpop.f32.mrb[104].mxu0 }
 0x62c   : > { %v3576_v30 = vpop.f32.mrb[105].mxu0 }
 0x62d   : > { %v3577_v31 = vpop.f32.mrb[106].mxu0 }
 0x62e   : > { %v3703_v32 = vpack.c.bf16 %v3577_v31, %v3574_v29  ;;  %v3579_v33 = vpop.f32.mrb[107].mxu0 }
 0x630   : > { %v3735_v12 = vmax.bf16 %v5290_v20, %v3703_v32 }
 0x633   : > { %v3582_v34 = vpop.f32.mrb[108].mxu0 }
 0x634   : > { %v3584_v35 = vpop.f32.mrb[109].mxu0 }
 0x635   : > { %v3585_v36 = vpop.f32.mrb[110].mxu0 }
 0x636   : > { %v3704_v37 = vpack.c.bf16 %v3585_v36, %v3582_v34  ;;  %v3587_v38 = vpop.f32.mrb[111].mxu0 }
 0x638   : > { %v3736_v17 = vmax.bf16 %v5290_v20, %v3704_v37 }
 0x63b   : > { %v5771_v39 = vpop.f32.mrb[112].mxu0 }
 0x63c   : > { %v3592_v40 = vpop.f32.mrb[113].mxu0 }
 0x63d   : > { %v3593_v41 = vpop.f32.mrb[114].mxu0 }
 0x63e   : > { %v3705_v42 = vpack.c.bf16 %v3593_v41, %v5771_v39  ;;  %v3595_v43 = vpop.f32.mrb[115].mxu0 }
 0x640   : > { %v3737_v31 = vmax.bf16 %v5290_v20, %v3705_v42 }
 0x643   : > { %v5774_v44 = vpop.f32.mrb[116].mxu0 }
 0x644   : > { %v3600_v45 = vpop.f32.mrb[117].mxu0 }
 0x645   : > { %v5776_v46 = vpop.f32.mrb[118].mxu0 }
 0x646   : > { %v3706_v47 = vpack.c.bf16 %v5776_v46, %v5774_v44  ;;  %v3603_v48 = vpop.f32.mrb[119].mxu0 }
 0x648   : > { %v3738_v38 = vmax.bf16 %v5290_v20, %v3706_v47 }
 0x64b   : > { %v5780_v49 = vpop.f32.mrb[120].mxu0 }
 0x64c   : > { %v3608_v50 = vpop.f32.mrb[121].mxu0 }
 0x64d   : > { %v5782_v51 = vpop.f32.mrb[122].mxu0 }
 0x64e   : > { %v3707_v52 = vpack.c.bf16 %v5782_v51, %v5780_v49  ;;  %v3611_v53 = vpop.f32.mrb[123].mxu0  ;;  %v4267_v49 = vcombine.low %v5767_v13, %v5767_v13 }
 0x650   : > { %v3739_v48 = vmax.bf16 %v5290_v20, %v3707_v52 }
 0x653   : > { %v5786_v54 = vpop.f32.mrb[124].mxu0 }
 0x654   : > { %v3616_v55 = vpop.f32.mrb[125].mxu0 }
 0x655   : > { %v5788_v56 = vpop.f32.mrb[126].mxu0 }
 0x656   : > { %v3708_v57 = vpack.c.bf16 %v5788_v56, %v5786_v54  ;;  %v3619_v58 = vpop.f32.mrb[127].mxu0 }
 0x658   : > { %v3740_v58 = vmax.bf16 %v5290_v20, %v3708_v57 }
 0x65b   : > { %v3622_v59 = vpop.f32.mrb[128].mxu0 }
 0x65c   : > { %v3624_v60 = vpop.f32.mrb[129].mxu0 }
 0x65d   : > { %v3625_v61 = vpop.f32.mrb[130].mxu0 }
 0x65e   : > { %v3709_v62 = vpack.c.bf16 %v3625_v61, %v3622_v59  ;;  %v3627_v63 = vpop.f32.mrb[131].mxu0 }
 0x660   : > { %v3741_v0 = vmax.bf16 %v5290_v20, %v3709_v62 }
 0x662   : > { %4327 = vmatprep.subr.bf16.mxu1 %v3741_v0 }
 0x663   : > { %v3630_v2 = vpop.f32.mrb[132].mxu0  ;;  %4328 = vmatpush3.bf16.msra.mxu1 %v3733_v1 }
 0x664   : > { %v3632_v3 = vpop.f32.mrb[133].mxu0 }
 0x665   : > { %v3633_v4 = vpop.f32.mrb[134].mxu0 }
 0x666   : > { %v3710_v6 = vpack.c.bf16 %v3633_v4, %v3630_v2  ;;  %v3635_v9 = vpop.f32.mrb[135].mxu0 }
 0x668   : > { %v3742_v5 = vmax.bf16 %v5290_v20, %v3710_v6 }
 0x66a   : > { %4329 = vmatprep.subr.bf16.mxu1 %v3742_v5 }
 0x66b   : > { %v3638_v8 = vpop.f32.mrb[136].mxu0  ;;  %4330 = vmatpush3.bf16.msra.mxu1 %v3734_v7 }
 0x66c   : > { %v3640_v11 = vpop.f32.mrb[137].mxu0 }
 0x66d   : > { %v3641_v14 = vpop.f32.mrb[138].mxu0 }
 0x66e   : > { %v3711_v16 = vpack.c.bf16 %v3641_v14, %v3638_v8  ;;  %v3643_v19 = vpop.f32.mrb[139].mxu0 }
 0x670   : > { %v3743_v10 = vmax.bf16 %v5290_v20, %v3711_v16 }
 0x672   : > { %4331 = vmatprep.subr.bf16.mxu1 %v3743_v10 }
 0x673   : > { %v3646_v21 = vpop.f32.mrb[140].mxu0  ;;  %4332 = vmatpush3.bf16.msra.mxu1 %v3735_v12 }
 0x674   : > { %v3648_v22 = vpop.f32.mrb[141].mxu0 }
 0x675   : > { %v3649_v23 = vpop.f32.mrb[142].mxu0 }
 0x676   : > { %v3712_v24 = vpack.c.bf16 %v3649_v23, %v3646_v21  ;;  %v3651_v25 = vpop.f32.mrb[143].mxu0 }
 0x678   : > { %v3744_v15 = vmax.bf16 %v5290_v20, %v3712_v24 }
 0x67a   : > { %4333 = vmatprep.subr.bf16.mxu1 %v3744_v15 }
 0x67b   : > { %v3654_v18 = vpop.f32.mrb[144].mxu0  ;;  %4334 = vmatpush3.bf16.msra.mxu1 %v3736_v17 }
 0x67c   : > { %v3656_v26 = vpop.f32.mrb[145].mxu0 }
 0x67d   : > { %v3657_v27 = vpop.f32.mrb[146].mxu0 }
 0x67e   : > { %v3713_v28 = vpack.c.bf16 %v3657_v27, %v3654_v18  ;;  %v3659_v29 = vpop.f32.mrb[147].mxu0 }
 0x680   : > { %v3745_v30 = vmax.bf16 %v5290_v20, %v3713_v28 }
 0x682   : > { %4335 = vmatprep.subr.bf16.mxu1 %v3745_v30 }
 0x683   : > { %v3662_v32 = vpop.f32.mrb[148].mxu0  ;;  %4336 = vmatpush3.bf16.msra.mxu1 %v3737_v31 }
 0x684   : > { %v3664_v33 = vpop.f32.mrb[149].mxu0 }
 0x685   : > { %v3665_v34 = vpop.f32.mrb[150].mxu0 }
 0x686   : > { %v3714_v35 = vpack.c.bf16 %v3665_v34, %v3662_v32  ;;  %v3667_v36 = vpop.f32.mrb[151].mxu0 }
 0x688   : > { %v3746_v37 = vmax.bf16 %v5290_v20, %v3714_v35 }
 0x68a   : > { %4337 = vmatprep.subr.bf16.mxu1 %v3746_v37 }
 0x68b   : > { %v3670_v39 = vpop.f32.mrb[152].mxu0  ;;  %4338 = vmatpush3.bf16.msra.mxu1 %v3738_v38 }
 0x68c   : > { %v3672_v40 = vpop.f32.mrb[153].mxu0 }
 0x68d   : > { %v3673_v41 = vpop.f32.mrb[154].mxu0 }
 0x68e   : > { %v3715_v42 = vpack.c.bf16 %v3673_v41, %v3670_v39  ;;  %v3675_v43 = vpop.f32.mrb[155].mxu0 }
 0x690   : > { %v3747_v45 = vmax.bf16 %v5290_v20, %v3715_v42 }
 0x692   : > { %4339 = vmatprep.subr.bf16.mxu1 %v3747_v45 }
 0x693   : > { %v3678_v50 = vpop.f32.mrb[156].mxu0  ;;  %4340 = vmatpush3.bf16.msra.mxu1 %v3739_v48 }
 0x694   : > { %v3680_v44 = vpop.f32.mrb[157].mxu0 }
 0x695   : > { %v3681_v46 = vpop.f32.mrb[158].mxu0 }
 0x696   : > { %v3716_v47 = vpack.c.bf16 %v3681_v46, %v3678_v50  ;;  %v3683_v53 = vpop.f32.mrb[159].mxu0 }
 0x698   : > { %v3748_v55 = vmax.bf16 %v5290_v20, %v3716_v47 }
 0x69a   : > { %4341 = vmatprep.subr.bf16.mxu1 %v3748_v55 }
 0x69b   : > { %4342 = vmatpush3.bf16.msra.mxu1 %v3740_v58 }
 0x69e   : > { %3838 = vmatmul.mubr.bf16.vlgmr.msra.gmra.mrb[160].mxu1 %v4267_v49 }
 0x6f1   : > { %v4321_v51 = vpop.f32.mrb[160].mxu0 }
 0x6f2   : > { %v4322_v52 = vpop.f32.mrb[161].mxu0 }
 0x6f3   : > { %v4323_v59 = vadd.f32 %v4322_v52, %v4321_v51  ;;  %v4324_v60 = vpop.f32.mrb[162].mxu0 }
 0x6f4   : > { %v4325_v61 = vpop.f32.mrb[163].mxu0 }
 0x771   : > { %v4343_v62 = vpop.f32.mrb[160].mxu1 }
 0x772   : > { %v4344_v63 = vpop.f32.mrb[161].mxu1 }
 0x773   : > { %v4345_v54 = vadd.f32 %v4344_v63, %v4343_v62  ;;  %v4346_v20 = vpop.f32.mrb[162].mxu1 }
 0x774   : > { %v4347_v56 = vpop.f32.mrb[163].mxu1 }
 0x775   : > { %v3840_v57 = vadd.f32 %v4345_v54, %v4323_v59 }
 0x777   : > { %3845 = vst [vmem:[%s244_s16] sm:$0x1] %v3840_v57 }
 0x778   : > { %5227 = shalt.err (!%p5224_p11)
}
 0x779   : > { %s5228_s26 = scalar_lea.hbm %s5824_s6, 16  ;;  %s5232_s12 = scalar_lea.hbm %s5871_s5, 32 }
 0x77a   : > { %p5229_p13 = scmp.ne.s32.totalorder %s5824_s6, %s5228_s26  ;;  %p5233_p6 = scmp.lt.u32.totalorder %s5824_s6, %s5871_s5 }
 0x77b   : > { %p5234_p9 = scmp.lt.u32.totalorder %s5232_s12, %s5228_s26  ;;  %p5236_p12 = scmp.lt.u32.totalorder %s5228_s26, %s5824_s6 }
 0x77c   : > { %p5230_p5 = pnand %p5229_p13, %p5884_p1 }
 0x77d   : > { %p5235_p10 = por %p5234_p9, %p5233_p6 }
 0x77e   : > { %p5231_p0 = pneg %p5230_p5 }
 0x77f   : > { %p5237_p2 = por %p5236_p12, %p5235_p10 }
 0x781   : > { %p5238_p3 = pnand %p5237_p2, %p5231_p0 }
 0x783   : > { %5241 = shalt.err (!%p5238_p3)
}
 0x784   : > { %4683 = dma.vmem_to_hbm [thread:$0]  (%p5884_p1), %s5826_s17, 16, %s5824_s6, %s3847_s8  }
 0x785 PF: > { %p4700_p4 = scmp.ge.s32.totalorder %s5284_s21, 2  ;;  %s3871_s15 = sand.u32 1, %s5272_s18  }
 0x786   : > { %p5885_p7 = scmp.ne.s32.totalorder %s5876_s29, 0  ;;  %s3872_s16 = scalar_lea.sflag [#allocation4], %s3871_s15 }
 0x788   : > { %p4693_p8 = pnand %p4700_p4, %p5885_p7 }
 0x78a   : > { %5267 = dma.done.wait (!%p4693_p8), %s3872_s16, 16  }
 0x78b   : > { %5269 = vsyncadd (!%p4693_p8), %s3872_s16, 4294967280  ;;  %p17_p11 = scmp.ge.s32.totalorder %s5347_s24, 4   ;;  %s5886_s18 = smov %s5276_s19 }
 0x78c   : > { %s5887_s19 = smov %s5280_s20  ;;  %s5888_s20 = smov %s5358_s27 }
 0x78d   : > { %s5889_s21 = smov %s5347_s24  ;;  %19 = sbr.rel (!%p17_p11) target bundleno = 5 (0x5), region = 84 }
 0x794   :  { %3876 = vsyncpa [#allocation3], 1 }
 0x795   :  { %3878 = vsyncpa [#allocation3 + $0x1], 1 }
 0x796   :  { %3879 = vsyncpa [#allocation6], 1 }
 0x797   :  { %3880 = vsyncpa [#allocation4], 1 }
 0x798   :  { %3882 = vsyncpa [#allocation4 + $0x1], 1 }

</bundles_post_ra>
